<compile_context>
chip_gen: v7x
topology: tpu7x:2x2x1
jax: 0.10.0
libtpu: 0.0.40
codegen_flags: <defaults>
</compile_context>

<pallas_src>
from math import sqrt

import jax
import jax.numpy as jnp
import numpy as np
from jax import lax
from jax.experimental import pallas as pl
from jax.experimental.pallas import tpu as pltpu

# ----------------------------- hyper-parameters ------------------------------
BATCH = 2
SEQ = 8
D_MODEL = 32
N_HEADS = 4
HEAD_DIM = D_MODEL // N_HEADS
D_FF = 64
NUM_REPEATS = 2          # depth of Repeat(decoder_layer)
LN_EPS = 1e-5            # PyTorch nn.LayerNorm default

# rows of the packed per-layer "small params" tile (8 sublanes x 128 lanes, f32)
_ROW_BO, _ROW_B1, _ROW_B2 = 0, 1, 2
_ROW_LN1G, _ROW_LN1B, _ROW_LN2G, _ROW_LN2B = 3, 4, 5, 6
_VEC_ROWS, _VEC_LANES = 8, 128


# ------------------------------ kernel helpers -------------------------------
def _layer_norm(x, gamma, beta):
    mu = jnp.mean(x, axis=-1, keepdims=True)
    xc = x - mu
    var = jnp.mean(xc * xc, axis=-1, keepdims=True)
    inv = lax.rsqrt(var + LN_EPS)
    return xc * inv * gamma + beta


# --------------------------------- kernel ------------------------------------
def fused_decoder_kernel(x_ref, wqkv_ref, bqkv_ref, wo_ref, w1_ref, w2_ref,
                         vec_ref, out_ref):
    S = SEQ
    n_layers = wqkv_ref.shape[0]

    x0 = x_ref[0].astype(jnp.float32)                       # (S, D)

    # Causal additive mask, hoisted out of the layer loop (built once per grid step).
    row = lax.broadcasted_iota(jnp.int32, (S, S), 0)
    col = lax.broadcasted_iota(jnp.int32, (S, S), 1)
    neg = jnp.where(col <= row, 0.0, -1e30).astype(jnp.float32)[None, :, :]  # (1,S,S)

    def layer_body(l, x):                                    # x: (S, D) f32
        wqkv = wqkv_ref[l]                                   # (H, D, 3*Dh)  (scale folded into Q slice)
        bqkv = bqkv_ref[l]                                   # (H, 1, 3*Dh)
        wo = wo_ref[l]                                       # (H, Dh, D)
        w1 = w1_ref[l]                                       # (D, D_FF)
        w2 = w2_ref[l]                                       # (D_FF, D)
        vec = vec_ref[l]                                     # (8, 128) packed small params

        bo = vec[_ROW_BO:_ROW_BO + 1, 0:D_MODEL]             # (1, D)
        b1 = vec[_ROW_B1:_ROW_B1 + 1, 0:D_FF]
        b2 = vec[_ROW_B2:_ROW_B2 + 1, 0:D_MODEL]
        ln1g = vec[_ROW_LN1G:_ROW_LN1G + 1, 0:D_MODEL]
        ln1b = vec[_ROW_LN1B:_ROW_LN1B + 1, 0:D_MODEL]
        ln2g = vec[_ROW_LN2G:_ROW_LN2G + 1, 0:D_MODEL]
        ln2b = vec[_ROW_LN2B:_ROW_LN2B + 1, 0:D_MODEL]

        # ----- fused, head-batched QKV projection (no lane-slice/stack relayouts) -----
        xb = jnp.broadcast_to(x[None], (N_HEADS, S, D_MODEL))          # (H, S, D)
        qkvh = jnp.einsum('hsd,hde->hse', xb, wqkv,
                          preferred_element_type=jnp.float32) + bqkv   # (H, S, 3*Dh)
        q = qkvh[:, :, 0:HEAD_DIM]                                     # scale pre-folded on host
        k = qkvh[:, :, HEAD_DIM:2 * HEAD_DIM]
        v = qkvh[:, :, 2 * HEAD_DIM:3 * HEAD_DIM]

        # ----- causal multi-head self-attention, batched over heads -----
        s = jnp.einsum('hqd,hkd->hqk', q, k,
                       preferred_element_type=jnp.float32) + neg       # (H, S, S)
        m = jnp.max(s, axis=-1, keepdims=True)
        p = jnp.exp(s - m)
        denom = jnp.sum(p, axis=-1, keepdims=True)
        r = pl.reciprocal(denom, approx=True)                          # EUP slot
        r = r * (2.0 - denom * r)                                      # one Newton step
        p = p * r
        o = jnp.einsum('hqk,hkd->hqd', p, v,
                       preferred_element_type=jnp.float32)             # (H, S, Dh)

        # out-projection: contraction against host-reshaped (H, Dh, D) weights,
        # then sum over heads (= concat_h(o_h) @ Wo).
        attn = jnp.sum(jnp.einsum('hqd,hde->hqe', o, wo,
                                  preferred_element_type=jnp.float32), axis=0) + bo  # (S, D)

        # residual + LayerNorm 1 (post-norm, PyTorch-style)
        y = _layer_norm(x + attn, ln1g, ln1b)

        # ----- feed-forward (ReLU) -----
        h1 = jnp.maximum(jnp.dot(y, w1, preferred_element_type=jnp.float32) + b1, 0.0)
        ff = jnp.dot(h1, w2, preferred_element_type=jnp.float32) + b2

        # residual + LayerNorm 2
        return _layer_norm(y + ff, ln2g, ln2b)

    z = lax.fori_loop(0, n_layers, layer_body, x0, unroll=True)
    out_ref[0] = z.astype(out_ref.dtype)

    # TODO(synk): dropout is identity here (eval mode); Repeat's second output
    # (per-layer attention weights) is discarded by RepeatedDecoderLayerWrapper
    # and is not computed.


# --------------------------------- wrapper -----------------------------------
def repeated_decoder_layer_wrapper(x, packed):
    """Forward of RepeatedDecoderLayerWrapper as a single fused pallas_call."""
    wqkv_h, bqkv_h, wo_h, w1, w2, vec = packed
    B, S, D = x.shape
    L = wqkv_h.shape[0]

    # Advisory cost estimate (per batch row per layer).
    flops_lr = (2 * S * D * 3 * D                 # QKV
                + 2 * 2 * N_HEADS * S * S * HEAD_DIM   # scores + p@v
                + 2 * S * D * D                   # out-proj
                + 2 * 2 * S * D * D_FF)           # FF1 + FF2
    trans_lr = N_HEADS * S * S + N_HEADS * S + 2 * S
    wbytes = L * 4 * (N_HEADS * D * 3 * HEAD_DIM + N_HEADS * 3 * HEAD_DIM
                      + N_HEADS * HEAD_DIM * D + D * D_FF + D_FF * D
                      + _VEC_ROWS * _VEC_LANES)
    cost = pl.CostEstimate(flops=B * L * flops_lr,
                           transcendentals=B * L * trans_lr,
                           bytes_accessed=2 * B * S * D * 4 + wbytes)

    return pl.pallas_call(
        fused_decoder_kernel,
        out_shape=jax.ShapeDtypeStruct((B, S, D), x.dtype),
        # batch axis kept "parallel" for v7x's 2 TensorCores; the layer axis is
        # collapsed into an in-kernel unrolled loop with resident weights.
        grid=(B,),
        in_specs=[
            pl.BlockSpec((1, S, D), lambda b: (b, 0, 0)),                  # x
            pl.BlockSpec(tuple(wqkv_h.shape), lambda b: (0, 0, 0, 0)),     # all-layer QKV weights
            pl.BlockSpec(tuple(bqkv_h.shape), lambda b: (0, 0, 0, 0)),     # all-layer QKV biases
            pl.BlockSpec(tuple(wo_h.shape), lambda b: (0, 0, 0, 0)),       # all-layer out-proj
            pl.BlockSpec(tuple(w1.shape), lambda b: (0, 0, 0)),            # all-layer FF1
            pl.BlockSpec(tuple(w2.shape), lambda b: (0, 0, 0)),            # all-layer FF2
            pl.BlockSpec(tuple(vec.shape), lambda b: (0, 0, 0)),           # biases + LN params
        ],
        out_specs=pl.BlockSpec((1, S, D), lambda b: (b, 0, 0)),
        compiler_params=pltpu.CompilerParams(dimension_semantics=("parallel",)),
        cost_estimate=cost,
    )(x, wqkv_h, bqkv_h, wo_h, w1, w2, vec)


# --------------------------- deterministic params ----------------------------
def init_layer_params(key):
    ks = jax.random.split(key, 12)

    def lin(k, fan_in, shape):
        return jax.random.normal(k, shape, jnp.float32) / sqrt(fan_in)

    wq = lin(ks[0], D_MODEL, (D_MODEL, D_MODEL))
    bq = 0.1 * jax.random.normal(ks[1], (1, D_MODEL), jnp.float32)
    wk = lin(ks[2], D_MODEL, (D_MODEL, D_MODEL))
    bk = 0.1 * jax.random.normal(ks[3], (1, D_MODEL), jnp.float32)
    wv = lin(ks[4], D_MODEL, (D_MODEL, D_MODEL))
    bv = 0.1 * jax.random.normal(ks[5], (1, D_MODEL), jnp.float32)
    wo = lin(ks[6], D_MODEL, (D_MODEL, D_MODEL))
    bo = 0.1 * jax.random.normal(ks[7], (1, D_MODEL), jnp.float32)
    ln1g = jnp.ones((1, D_MODEL), jnp.float32)
    ln1b = jnp.zeros((1, D_MODEL), jnp.float32)
    w1 = lin(ks[8], D_MODEL, (D_MODEL, D_FF))
    b1 = 0.1 * jax.random.normal(ks[9], (1, D_FF), jnp.float32)
    w2 = lin(ks[10], D_FF, (D_FF, D_MODEL))
    b2 = 0.1 * jax.random.normal(ks[11], (1, D_MODEL), jnp.float32)
    ln2g = jnp.ones((1, D_MODEL), jnp.float32)
    ln2b = jnp.zeros((1, D_MODEL), jnp.float32)
    return [wq, bq, wk, bk, wv, bv, wo, bo,
            ln1g, ln1b, w1, b1, w2, b2, ln2g, ln2b]


def _to_heads(w):
    """(D, D) weight with head-major output features -> (H, D, HEAD_DIM)."""
    return jnp.transpose(w.reshape(D_MODEL, N_HEADS, HEAD_DIM), (1, 0, 2))


def pack_params(layer_params_list):
    """Host-side packing: per-head QKV/out-proj layout, 1/sqrt(Dh) folded into Q,
    small vectors packed into one (8,128) tile per layer, stacked along L."""
    scale = 1.0 / sqrt(HEAD_DIM)
    wqkv_l, bqkv_l, wo_l, w1_l, w2_l, vec_l = [], [], [], [], [], []
    for p in layer_params_list:
        (pwq, pbq, pwk, pbk, pwv, pbv, pwo, pbo,
         pln1g, pln1b, pw1, pb1, pw2, pb2, pln2g, pln2b) = p

        wqkv_h = jnp.concatenate(
            [_to_heads(pwq * scale), _to_heads(pwk), _to_heads(pwv)], axis=-1)  # (H, D, 3Dh)
        bqkv_h = jnp.concatenate(
            [(pbq[0] * scale).reshape(N_HEADS, HEAD_DIM)[:, None, :],
             pbk[0].reshape(N_HEADS, HEAD_DIM)[:, None, :],
             pbv[0].reshape(N_HEADS, HEAD_DIM)[:, None, :]], axis=-1)           # (H, 1, 3Dh)
        wo_h = pwo.reshape(N_HEADS, HEAD_DIM, D_MODEL)                          # (H, Dh, D)

        vec = jnp.zeros((_VEC_ROWS, _VEC_LANES), jnp.float32)
        vec = vec.at[_ROW_BO, 0:D_MODEL].set(pbo[0])
        vec = vec.at[_ROW_B1, 0:D_FF].set(pb1[0])
        vec = vec.at[_ROW_B2, 0:D_MODEL].set(pb2[0])
        vec = vec.at[_ROW_LN1G, 0:D_MODEL].set(pln1g[0])
        vec = vec.at[_ROW_LN1B, 0:D_MODEL].set(pln1b[0])
        vec = vec.at[_ROW_LN2G, 0:D_MODEL].set(pln2g[0])
        vec = vec.at[_ROW_LN2B, 0:D_MODEL].set(pln2b[0])

        wqkv_l.append(wqkv_h); bqkv_l.append(bqkv_h); wo_l.append(wo_h)
        w1_l.append(pw1); w2_l.append(pw2); vec_l.append(vec)

    return (jnp.stack(wqkv_l), jnp.stack(bqkv_l), jnp.stack(wo_l),
            jnp.stack(w1_l), jnp.stack(w2_l), jnp.stack(vec_l))


# ------------------------------ pure-JAX reference ---------------------------
def decoder_layer_ref(x, p):
    (wq, bq, wk, bk, wv, bv, wo, bo,
     ln1g, ln1b, w1, b1, w2, b2, ln2g, ln2b) = p
    B, S, D = x.shape

    def ln(v, g, b):
        mu = jnp.mean(v, -1, keepdims=True)
        var = jnp.mean((v - mu) ** 2, -1, keepdims=True)
        return (v - mu) / jnp.sqrt(var + LN_EPS) * g + b

    q = (x @ wq + bq).reshape(B, S, N_HEADS, HEAD_DIM)
    k = (x @ wk + bk).reshape(B, S, N_HEADS, HEAD_DIM)
    v = (x @ wv + bv).reshape(B, S, N_HEADS, HEAD_DIM)
    s = jnp.einsum("bqhd,bkhd->bhqk", q, k) / sqrt(HEAD_DIM)
    mask = jnp.tril(jnp.ones((S, S), bool))
    s = jnp.where(mask, s, -1e30)
    p_attn = jax.nn.softmax(s, axis=-1)
    attn = jnp.einsum("bhqk,bkhd->bqhd", p_attn, v).reshape(B, S, D)
    attn = attn @ wo + bo
    y = ln(x + attn, ln1g, ln1b)
    ff = jnp.maximum(y @ w1 + b1, 0.0) @ w2 + b2
    return ln(y + ff, ln2g, ln2b)


def repeated_ref(x, layer_params_list):
    for p in layer_params_list:
        x = decoder_layer_ref(x, p)
    return x


# ----------------------------------- main -------------------------------------
if __name__ == "__main__":
    root = jax.random.PRNGKey(0)
    kx, *layer_keys = jax.random.split(root, 1 + NUM_REPEATS)

    x = jax.random.normal(kx, (BATCH, SEQ, D_MODEL), jnp.float32)
    layer_params = [init_layer_params(k) for k in layer_keys]
    packed = pack_params(layer_params)

    out = repeated_decoder_layer_wrapper(x, packed)
    out = jax.block_until_ready(out)

    ref = repeated_ref(x, layer_params)
    np.testing.assert_allclose(np.asarray(out), np.asarray(ref), rtol=2e-4, atol=2e-4)

    print("KERNEL_OK")
</pallas_src>

<mosaic_0001>
module attributes {stable_mosaic.version = 11 : i64} {
  func.func @fused_decoder_kernel(%arg0: i32, %arg1: memref<1x8x32xf32, #tpu.memory_space<vmem>>, %arg2: memref<2x4x32x24xf32, #tpu.memory_space<vmem>>, %arg3: memref<2x4x1x24xf32, #tpu.memory_space<vmem>>, %arg4: memref<2x4x8x32xf32, #tpu.memory_space<vmem>>, %arg5: memref<2x32x64xf32, #tpu.memory_space<vmem>>, %arg6: memref<2x64x32xf32, #tpu.memory_space<vmem>>, %arg7: memref<2x8x128xf32, #tpu.memory_space<vmem>>, %arg8: memref<1x8x32xf32, #tpu.memory_space<vmem>>) attributes {dimension_semantics = [#tpu.dimension_semantics<parallel>], iteration_bounds = array<i64: 2>, scalar_prefetch = 0 : i64, scratch_operands = 0 : i64, tpu.core_type = #tpu.core_type<tc>, window_params = [{transform_indices = @transform_0, window_bounds = array<i64: 1, 8, 32>}, {pipeline_mode = #tpu.pipeline_mode<synchronous>, transform_indices = @transform_1, window_bounds = array<i64: 2, 4, 32, 24>}, {pipeline_mode = #tpu.pipeline_mode<synchronous>, transform_indices = @transform_2, window_bounds = array<i64: 2, 4, 1, 24>}, {pipeline_mode = #tpu.pipeline_mode<synchronous>, transform_indices = @transform_3, window_bounds = array<i64: 2, 4, 8, 32>}, {pipeline_mode = #tpu.pipeline_mode<synchronous>, transform_indices = @transform_4, window_bounds = array<i64: 2, 32, 64>}, {pipeline_mode = #tpu.pipeline_mode<synchronous>, transform_indices = @transform_5, window_bounds = array<i64: 2, 64, 32>}, {pipeline_mode = #tpu.pipeline_mode<synchronous>, transform_indices = @transform_6, window_bounds = array<i64: 2, 8, 128>}, {transform_indices = @transform_7, window_bounds = array<i64: 1, 8, 32>}]} {
    %c0 = arith.constant 0 : index
    %c0_0 = arith.constant 0 : index
    %c0_1 = arith.constant 0 : index
    %0 = vector.load %arg1[%c0, %c0_0, %c0_1] : memref<1x8x32xf32, #tpu.memory_space<vmem>>, vector<1x8x32xf32>
    %1 = vector.shape_cast %0 : vector<1x8x32xf32> to vector<8x32xf32>
    %2 = tpu.iota {dimensions = array<i32: 0>} : vector<8x8xi32>
    %3 = tpu.iota {dimensions = array<i32: 1>} : vector<8x8xi32>
    %4 = arith.cmpi sle, %3, %2 : vector<8x8xi32>
    %cst = arith.constant 0.000000e+00 : f32
    %cst_2 = arith.constant -1.000000e+30 : f32
    %5 = vector.broadcast %cst : f32 to vector<8x8xf32>
    %6 = vector.broadcast %cst_2 : f32 to vector<8x8xf32>
    %7 = arith.select %4, %5, %6 : vector<8x8xi1>, vector<8x8xf32>
    %8 = vector.shape_cast %7 : vector<8x8xf32> to vector<1x8x8xf32>
    %c0_i32 = arith.constant 0 : i32
    %9 = arith.index_cast %c0_i32 : i32 to index
    %c0_3 = arith.constant 0 : index
    %c0_4 = arith.constant 0 : index
    %c0_5 = arith.constant 0 : index
    %10 = vector.load %arg2[%9, %c0_3, %c0_4, %c0_5] : memref<2x4x32x24xf32, #tpu.memory_space<vmem>>, vector<1x4x32x24xf32>
    %11 = vector.shape_cast %10 : vector<1x4x32x24xf32> to vector<4x32x24xf32>
    %12 = arith.index_cast %c0_i32 : i32 to index
    %c0_6 = arith.constant 0 : index
    %c0_7 = arith.constant 0 : index
    %c0_8 = arith.constant 0 : index
    %13 = vector.load %arg3[%12, %c0_6, %c0_7, %c0_8] : memref<2x4x1x24xf32, #tpu.memory_space<vmem>>, vector<1x4x1x24xf32>
    %14 = vector.shape_cast %13 : vector<1x4x1x24xf32> to vector<4x1x24xf32>
    %15 = arith.index_cast %c0_i32 : i32 to index
    %c0_9 = arith.constant 0 : index
    %c0_10 = arith.constant 0 : index
    %c0_11 = arith.constant 0 : index
    %16 = vector.load %arg4[%15, %c0_9, %c0_10, %c0_11] : memref<2x4x8x32xf32, #tpu.memory_space<vmem>>, vector<1x4x8x32xf32>
    %17 = vector.shape_cast %16 : vector<1x4x8x32xf32> to vector<4x8x32xf32>
    %18 = arith.index_cast %c0_i32 : i32 to index
    %c0_12 = arith.constant 0 : index
    %c0_13 = arith.constant 0 : index
    %19 = vector.load %arg5[%18, %c0_12, %c0_13] : memref<2x32x64xf32, #tpu.memory_space<vmem>>, vector<1x32x64xf32>
    %20 = vector.shape_cast %19 : vector<1x32x64xf32> to vector<32x64xf32>
    %21 = arith.index_cast %c0_i32 : i32 to index
    %c0_14 = arith.constant 0 : index
    %c0_15 = arith.constant 0 : index
    %22 = vector.load %arg6[%21, %c0_14, %c0_15] : memref<2x64x32xf32, #tpu.memory_space<vmem>>, vector<1x64x32xf32>
    %23 = vector.shape_cast %22 : vector<1x64x32xf32> to vector<64x32xf32>
    %24 = arith.index_cast %c0_i32 : i32 to index
    %c0_16 = arith.constant 0 : index
    %c0_17 = arith.constant 0 : index
    %25 = vector.load %arg7[%24, %c0_16, %c0_17] : memref<2x8x128xf32, #tpu.memory_space<vmem>>, vector<1x8x128xf32>
    %26 = vector.shape_cast %25 : vector<1x8x128xf32> to vector<8x128xf32>
    %27 = vector.extract_strided_slice %26 {offsets = [0, 0], sizes = [1, 32], strides = [1, 1]} : vector<8x128xf32> to vector<1x32xf32>
    %28 = vector.extract_strided_slice %26 {offsets = [1, 0], sizes = [1, 64], strides = [1, 1]} : vector<8x128xf32> to vector<1x64xf32>
    %29 = vector.extract_strided_slice %26 {offsets = [2, 0], sizes = [1, 32], strides = [1, 1]} : vector<8x128xf32> to vector<1x32xf32>
    %30 = vector.extract_strided_slice %26 {offsets = [3, 0], sizes = [1, 32], strides = [1, 1]} : vector<8x128xf32> to vector<1x32xf32>
    %31 = vector.extract_strided_slice %26 {offsets = [4, 0], sizes = [1, 32], strides = [1, 1]} : vector<8x128xf32> to vector<1x32xf32>
    %32 = vector.extract_strided_slice %26 {offsets = [5, 0], sizes = [1, 32], strides = [1, 1]} : vector<8x128xf32> to vector<1x32xf32>
    %33 = vector.extract_strided_slice %26 {offsets = [6, 0], sizes = [1, 32], strides = [1, 1]} : vector<8x128xf32> to vector<1x32xf32>
    %34 = vector.shape_cast %1 : vector<8x32xf32> to vector<1x8x32xf32>
    %35 = vector.shape_cast %34 : vector<1x8x32xf32> to vector<1x8x32xf32>
    %36 = vector.broadcast %35 : vector<1x8x32xf32> to vector<4x8x32xf32>
    "tpu.trace_start"() <{level = 10 : i32, message = "hsd,hde->hse"}> : () -> ()
    %cst_18 = arith.constant dense<0.000000e+00> : vector<4x8x24xf32>
    %37 = tpu.matmul %36, %11, %cst_18 {dimension_numbers = #tpu.dot_dimension_numbers<[2], [1], [1], [2], [0, 0, 0, 1, 1, 2], [0], [0]>} : vector<4x8x32xf32>, vector<4x32x24xf32>, vector<4x8x24xf32> -> vector<4x8x24xf32>
    "tpu.trace_stop"() : () -> ()
    %38 = vector.broadcast %14 : vector<4x1x24xf32> to vector<4x8x24xf32>
    %39 = arith.addf %37, %38 : vector<4x8x24xf32>
    %40 = vector.extract_strided_slice %39 {offsets = [0, 0, 0], sizes = [4, 8, 8], strides = [1, 1, 1]} : vector<4x8x24xf32> to vector<4x8x8xf32>
    %41 = vector.extract_strided_slice %39 {offsets = [0, 0, 8], sizes = [4, 8, 8], strides = [1, 1, 1]} : vector<4x8x24xf32> to vector<4x8x8xf32>
    %42 = vector.extract_strided_slice %39 {offsets = [0, 0, 16], sizes = [4, 8, 8], strides = [1, 1, 1]} : vector<4x8x24xf32> to vector<4x8x8xf32>
    "tpu.trace_start"() <{level = 10 : i32, message = "hqd,hkd->hqk"}> : () -> ()
    %cst_19 = arith.constant dense<0.000000e+00> : vector<4x8x8xf32>
    %43 = tpu.matmul %40, %41, %cst_19 {dimension_numbers = #tpu.dot_dimension_numbers<[2], [2], [1], [1], [0, 0, 0, 1, 1, 1], [0], [0]>} : vector<4x8x8xf32>, vector<4x8x8xf32>, vector<4x8x8xf32> -> vector<4x8x8xf32>
    "tpu.trace_stop"() : () -> ()
    %44 = vector.broadcast %8 : vector<1x8x8xf32> to vector<4x8x8xf32>
    %45 = arith.addf %43, %44 : vector<4x8x8xf32>
    %cst_20 = arith.constant dense<0xFF800000> : vector<4x8xf32>
    %46 = vector.multi_reduction <maximumf>, %45, %cst_20 [2] : vector<4x8x8xf32> to vector<4x8xf32>
    %47 = vector.shape_cast %46 : vector<4x8xf32> to vector<4x8x1xf32>
    %48 = vector.broadcast %47 : vector<4x8x1xf32> to vector<4x8x8xf32>
    %49 = arith.subf %45, %48 : vector<4x8x8xf32>
    %50 = math.exp %49 : vector<4x8x8xf32>
    %cst_21 = arith.constant dense<0.000000e+00> : vector<4x8xf32>
    %51 = vector.multi_reduction <add>, %50, %cst_21 [2] : vector<4x8x8xf32> to vector<4x8xf32>
    %52 = vector.shape_cast %51 : vector<4x8xf32> to vector<4x8x1xf32>
    %53 = tpu.reciprocal %52 {approx = true} : vector<4x8x1xf32> -> vector<4x8x1xf32>
    %54 = arith.mulf %52, %53 : vector<4x8x1xf32>
    %cst_22 = arith.constant 2.000000e+00 : f32
    %55 = vector.broadcast %cst_22 : f32 to vector<4x8x1xf32>
    %56 = arith.subf %55, %54 : vector<4x8x1xf32>
    %57 = arith.mulf %53, %56 : vector<4x8x1xf32>
    %58 = vector.broadcast %57 : vector<4x8x1xf32> to vector<4x8x8xf32>
    %59 = arith.mulf %50, %58 : vector<4x8x8xf32>
    "tpu.trace_start"() <{level = 10 : i32, message = "hqk,hkd->hqd"}> : () -> ()
    %cst_23 = arith.constant dense<0.000000e+00> : vector<4x8x8xf32>
    %60 = tpu.matmul %59, %42, %cst_23 {dimension_numbers = #tpu.dot_dimension_numbers<[2], [1], [1], [2], [0, 0, 0, 1, 1, 2], [0], [0]>} : vector<4x8x8xf32>, vector<4x8x8xf32>, vector<4x8x8xf32> -> vector<4x8x8xf32>
    "tpu.trace_stop"() : () -> ()
    "tpu.trace_start"() <{level = 10 : i32, message = "hqd,hde->hqe"}> : () -> ()
    %cst_24 = arith.constant dense<0.000000e+00> : vector<4x8x32xf32>
    %61 = tpu.matmul %60, %17, %cst_24 {dimension_numbers = #tpu.dot_dimension_numbers<[2], [1], [1], [2], [0, 0, 0, 1, 1, 2], [0], [0]>} : vector<4x8x8xf32>, vector<4x8x32xf32>, vector<4x8x32xf32> -> vector<4x8x32xf32>
    "tpu.trace_stop"() : () -> ()
    %cst_25 = arith.constant dense<0.000000e+00> : vector<8x32xf32>
    %62 = vector.multi_reduction <add>, %61, %cst_25 [0] : vector<4x8x32xf32> to vector<8x32xf32>
    %63 = vector.broadcast %27 : vector<1x32xf32> to vector<8x32xf32>
    %64 = arith.addf %62, %63 : vector<8x32xf32>
    %65 = arith.addf %1, %64 : vector<8x32xf32>
    %cst_26 = arith.constant dense<0.000000e+00> : vector<8xf32>
    %66 = vector.multi_reduction <add>, %65, %cst_26 [1] : vector<8x32xf32> to vector<8xf32>
    %67 = vector.shape_cast %66 : vector<8xf32> to vector<8x1xf32>
    %cst_27 = arith.constant 3.200000e+01 : f32
    %68 = vector.broadcast %cst_27 : f32 to vector<8x1xf32>
    %69 = arith.divf %67, %68 : vector<8x1xf32>
    %70 = vector.broadcast %69 : vector<8x1xf32> to vector<8x32xf32>
    %71 = arith.subf %65, %70 : vector<8x32xf32>
    %72 = arith.mulf %71, %71 : vector<8x32xf32>
    %cst_28 = arith.constant dense<0.000000e+00> : vector<8xf32>
    %73 = vector.multi_reduction <add>, %72, %cst_28 [1] : vector<8x32xf32> to vector<8xf32>
    %74 = vector.shape_cast %73 : vector<8xf32> to vector<8x1xf32>
    %cst_29 = arith.constant 3.200000e+01 : f32
    %75 = vector.broadcast %cst_29 : f32 to vector<8x1xf32>
    %76 = arith.divf %74, %75 : vector<8x1xf32>
    %cst_30 = arith.constant 9.99999974E-6 : f32
    %77 = vector.broadcast %cst_30 : f32 to vector<8x1xf32>
    %78 = arith.addf %76, %77 : vector<8x1xf32>
    %79 = math.rsqrt %78 : vector<8x1xf32>
    %80 = vector.broadcast %79 : vector<8x1xf32> to vector<8x32xf32>
    %81 = arith.mulf %71, %80 : vector<8x32xf32>
    %82 = vector.broadcast %30 : vector<1x32xf32> to vector<8x32xf32>
    %83 = arith.mulf %81, %82 : vector<8x32xf32>
    %84 = vector.broadcast %31 : vector<1x32xf32> to vector<8x32xf32>
    %85 = arith.addf %83, %84 : vector<8x32xf32>
    %cst_31 = arith.constant dense<0.000000e+00> : vector<8x64xf32>
    %86 = tpu.matmul %85, %20, %cst_31 {dimension_numbers = #tpu.dot_dimension_numbers<[1], [0], [0], [1], [0, 0, 1, 1], [], []>} : vector<8x32xf32>, vector<32x64xf32>, vector<8x64xf32> -> vector<8x64xf32>
    %87 = vector.broadcast %28 : vector<1x64xf32> to vector<8x64xf32>
    %88 = arith.addf %86, %87 : vector<8x64xf32>
    %cst_32 = arith.constant 0.000000e+00 : f32
    %89 = vector.broadcast %cst_32 : f32 to vector<8x64xf32>
    %90 = arith.maximumf %88, %89 : vector<8x64xf32>
    %cst_33 = arith.constant dense<0.000000e+00> : vector<8x32xf32>
    %91 = tpu.matmul %90, %23, %cst_33 {dimension_numbers = #tpu.dot_dimension_numbers<[1], [0], [0], [1], [0, 0, 1, 1], [], []>} : vector<8x64xf32>, vector<64x32xf32>, vector<8x32xf32> -> vector<8x32xf32>
    %92 = vector.broadcast %29 : vector<1x32xf32> to vector<8x32xf32>
    %93 = arith.addf %91, %92 : vector<8x32xf32>
    %94 = arith.addf %85, %93 : vector<8x32xf32>
    %cst_34 = arith.constant dense<0.000000e+00> : vector<8xf32>
    %95 = vector.multi_reduction <add>, %94, %cst_34 [1] : vector<8x32xf32> to vector<8xf32>
    %96 = vector.shape_cast %95 : vector<8xf32> to vector<8x1xf32>
    %cst_35 = arith.constant 3.200000e+01 : f32
    %97 = vector.broadcast %cst_35 : f32 to vector<8x1xf32>
    %98 = arith.divf %96, %97 : vector<8x1xf32>
    %99 = vector.broadcast %98 : vector<8x1xf32> to vector<8x32xf32>
    %100 = arith.subf %94, %99 : vector<8x32xf32>
    %101 = arith.mulf %100, %100 : vector<8x32xf32>
    %cst_36 = arith.constant dense<0.000000e+00> : vector<8xf32>
    %102 = vector.multi_reduction <add>, %101, %cst_36 [1] : vector<8x32xf32> to vector<8xf32>
    %103 = vector.shape_cast %102 : vector<8xf32> to vector<8x1xf32>
    %cst_37 = arith.constant 3.200000e+01 : f32
    %104 = vector.broadcast %cst_37 : f32 to vector<8x1xf32>
    %105 = arith.divf %103, %104 : vector<8x1xf32>
    %cst_38 = arith.constant 9.99999974E-6 : f32
    %106 = vector.broadcast %cst_38 : f32 to vector<8x1xf32>
    %107 = arith.addf %105, %106 : vector<8x1xf32>
    %108 = math.rsqrt %107 : vector<8x1xf32>
    %109 = vector.broadcast %108 : vector<8x1xf32> to vector<8x32xf32>
    %110 = arith.mulf %100, %109 : vector<8x32xf32>
    %111 = vector.broadcast %32 : vector<1x32xf32> to vector<8x32xf32>
    %112 = arith.mulf %110, %111 : vector<8x32xf32>
    %113 = vector.broadcast %33 : vector<1x32xf32> to vector<8x32xf32>
    %114 = arith.addf %112, %113 : vector<8x32xf32>
    %c1_i32 = arith.constant 1 : i32
    %115 = arith.index_cast %c1_i32 : i32 to index
    %c0_39 = arith.constant 0 : index
    %c0_40 = arith.constant 0 : index
    %c0_41 = arith.constant 0 : index
    %116 = vector.load %arg2[%115, %c0_39, %c0_40, %c0_41] : memref<2x4x32x24xf32, #tpu.memory_space<vmem>>, vector<1x4x32x24xf32>
    %117 = vector.shape_cast %116 : vector<1x4x32x24xf32> to vector<4x32x24xf32>
    %118 = arith.index_cast %c1_i32 : i32 to index
    %c0_42 = arith.constant 0 : index
    %c0_43 = arith.constant 0 : index
    %c0_44 = arith.constant 0 : index
    %119 = vector.load %arg3[%118, %c0_42, %c0_43, %c0_44] : memref<2x4x1x24xf32, #tpu.memory_space<vmem>>, vector<1x4x1x24xf32>
    %120 = vector.shape_cast %119 : vector<1x4x1x24xf32> to vector<4x1x24xf32>
    %121 = arith.index_cast %c1_i32 : i32 to index
    %c0_45 = arith.constant 0 : index
    %c0_46 = arith.constant 0 : index
    %c0_47 = arith.constant 0 : index
    %122 = vector.load %arg4[%121, %c0_45, %c0_46, %c0_47] : memref<2x4x8x32xf32, #tpu.memory_space<vmem>>, vector<1x4x8x32xf32>
    %123 = vector.shape_cast %122 : vector<1x4x8x32xf32> to vector<4x8x32xf32>
    %124 = arith.index_cast %c1_i32 : i32 to index
    %c0_48 = arith.constant 0 : index
    %c0_49 = arith.constant 0 : index
    %125 = vector.load %arg5[%124, %c0_48, %c0_49] : memref<2x32x64xf32, #tpu.memory_space<vmem>>, vector<1x32x64xf32>
    %126 = vector.shape_cast %125 : vector<1x32x64xf32> to vector<32x64xf32>
    %127 = arith.index_cast %c1_i32 : i32 to index
    %c0_50 = arith.constant 0 : index
    %c0_51 = arith.constant 0 : index
    %128 = vector.load %arg6[%127, %c0_50, %c0_51] : memref<2x64x32xf32, #tpu.memory_space<vmem>>, vector<1x64x32xf32>
    %129 = vector.shape_cast %128 : vector<1x64x32xf32> to vector<64x32xf32>
    %130 = arith.index_cast %c1_i32 : i32 to index
    %c0_52 = arith.constant 0 : index
    %c0_53 = arith.constant 0 : index
    %131 = vector.load %arg7[%130, %c0_52, %c0_53] : memref<2x8x128xf32, #tpu.memory_space<vmem>>, vector<1x8x128xf32>
    %132 = vector.shape_cast %131 : vector<1x8x128xf32> to vector<8x128xf32>
    %133 = vector.extract_strided_slice %132 {offsets = [0, 0], sizes = [1, 32], strides = [1, 1]} : vector<8x128xf32> to vector<1x32xf32>
    %134 = vector.extract_strided_slice %132 {offsets = [1, 0], sizes = [1, 64], strides = [1, 1]} : vector<8x128xf32> to vector<1x64xf32>
    %135 = vector.extract_strided_slice %132 {offsets = [2, 0], sizes = [1, 32], strides = [1, 1]} : vector<8x128xf32> to vector<1x32xf32>
    %136 = vector.extract_strided_slice %132 {offsets = [3, 0], sizes = [1, 32], strides = [1, 1]} : vector<8x128xf32> to vector<1x32xf32>
    %137 = vector.extract_strided_slice %132 {offsets = [4, 0], sizes = [1, 32], strides = [1, 1]} : vector<8x128xf32> to vector<1x32xf32>
    %138 = vector.extract_strided_slice %132 {offsets = [5, 0], sizes = [1, 32], strides = [1, 1]} : vector<8x128xf32> to vector<1x32xf32>
    %139 = vector.extract_strided_slice %132 {offsets = [6, 0], sizes = [1, 32], strides = [1, 1]} : vector<8x128xf32> to vector<1x32xf32>
    %140 = vector.shape_cast %114 : vector<8x32xf32> to vector<1x8x32xf32>
    %141 = vector.shape_cast %140 : vector<1x8x32xf32> to vector<1x8x32xf32>
    %142 = vector.broadcast %141 : vector<1x8x32xf32> to vector<4x8x32xf32>
    "tpu.trace_start"() <{level = 10 : i32, message = "hsd,hde->hse"}> : () -> ()
    %cst_54 = arith.constant dense<0.000000e+00> : vector<4x8x24xf32>
    %143 = tpu.matmul %142, %117, %cst_54 {dimension_numbers = #tpu.dot_dimension_numbers<[2], [1], [1], [2], [0, 0, 0, 1, 1, 2], [0], [0]>} : vector<4x8x32xf32>, vector<4x32x24xf32>, vector<4x8x24xf32> -> vector<4x8x24xf32>
    "tpu.trace_stop"() : () -> ()
    %144 = vector.broadcast %120 : vector<4x1x24xf32> to vector<4x8x24xf32>
    %145 = arith.addf %143, %144 : vector<4x8x24xf32>
    %146 = vector.extract_strided_slice %145 {offsets = [0, 0, 0], sizes = [4, 8, 8], strides = [1, 1, 1]} : vector<4x8x24xf32> to vector<4x8x8xf32>
    %147 = vector.extract_strided_slice %145 {offsets = [0, 0, 8], sizes = [4, 8, 8], strides = [1, 1, 1]} : vector<4x8x24xf32> to vector<4x8x8xf32>
    %148 = vector.extract_strided_slice %145 {offsets = [0, 0, 16], sizes = [4, 8, 8], strides = [1, 1, 1]} : vector<4x8x24xf32> to vector<4x8x8xf32>
    "tpu.trace_start"() <{level = 10 : i32, message = "hqd,hkd->hqk"}> : () -> ()
    %cst_55 = arith.constant dense<0.000000e+00> : vector<4x8x8xf32>
    %149 = tpu.matmul %146, %147, %cst_55 {dimension_numbers = #tpu.dot_dimension_numbers<[2], [2], [1], [1], [0, 0, 0, 1, 1, 1], [0], [0]>} : vector<4x8x8xf32>, vector<4x8x8xf32>, vector<4x8x8xf32> -> vector<4x8x8xf32>
    "tpu.trace_stop"() : () -> ()
    %150 = vector.broadcast %8 : vector<1x8x8xf32> to vector<4x8x8xf32>
    %151 = arith.addf %149, %150 : vector<4x8x8xf32>
    %cst_56 = arith.constant dense<0xFF800000> : vector<4x8xf32>
    %152 = vector.multi_reduction <maximumf>, %151, %cst_56 [2] : vector<4x8x8xf32> to vector<4x8xf32>
    %153 = vector.shape_cast %152 : vector<4x8xf32> to vector<4x8x1xf32>
    %154 = vector.broadcast %153 : vector<4x8x1xf32> to vector<4x8x8xf32>
    %155 = arith.subf %151, %154 : vector<4x8x8xf32>
    %156 = math.exp %155 : vector<4x8x8xf32>
    %cst_57 = arith.constant dense<0.000000e+00> : vector<4x8xf32>
    %157 = vector.multi_reduction <add>, %156, %cst_57 [2] : vector<4x8x8xf32> to vector<4x8xf32>
    %158 = vector.shape_cast %157 : vector<4x8xf32> to vector<4x8x1xf32>
    %159 = tpu.reciprocal %158 {approx = true} : vector<4x8x1xf32> -> vector<4x8x1xf32>
    %160 = arith.mulf %158, %159 : vector<4x8x1xf32>
    %cst_58 = arith.constant 2.000000e+00 : f32
    %161 = vector.broadcast %cst_58 : f32 to vector<4x8x1xf32>
    %162 = arith.subf %161, %160 : vector<4x8x1xf32>
    %163 = arith.mulf %159, %162 : vector<4x8x1xf32>
    %164 = vector.broadcast %163 : vector<4x8x1xf32> to vector<4x8x8xf32>
    %165 = arith.mulf %156, %164 : vector<4x8x8xf32>
    "tpu.trace_start"() <{level = 10 : i32, message = "hqk,hkd->hqd"}> : () -> ()
    %cst_59 = arith.constant dense<0.000000e+00> : vector<4x8x8xf32>
    %166 = tpu.matmul %165, %148, %cst_59 {dimension_numbers = #tpu.dot_dimension_numbers<[2], [1], [1], [2], [0, 0, 0, 1, 1, 2], [0], [0]>} : vector<4x8x8xf32>, vector<4x8x8xf32>, vector<4x8x8xf32> -> vector<4x8x8xf32>
    "tpu.trace_stop"() : () -> ()
    "tpu.trace_start"() <{level = 10 : i32, message = "hqd,hde->hqe"}> : () -> ()
    %cst_60 = arith.constant dense<0.000000e+00> : vector<4x8x32xf32>
    %167 = tpu.matmul %166, %123, %cst_60 {dimension_numbers = #tpu.dot_dimension_numbers<[2], [1], [1], [2], [0, 0, 0, 1, 1, 2], [0], [0]>} : vector<4x8x8xf32>, vector<4x8x32xf32>, vector<4x8x32xf32> -> vector<4x8x32xf32>
    "tpu.trace_stop"() : () -> ()
    %cst_61 = arith.constant dense<0.000000e+00> : vector<8x32xf32>
    %168 = vector.multi_reduction <add>, %167, %cst_61 [0] : vector<4x8x32xf32> to vector<8x32xf32>
    %169 = vector.broadcast %133 : vector<1x32xf32> to vector<8x32xf32>
    %170 = arith.addf %168, %169 : vector<8x32xf32>
    %171 = arith.addf %114, %170 : vector<8x32xf32>
    %cst_62 = arith.constant dense<0.000000e+00> : vector<8xf32>
    %172 = vector.multi_reduction <add>, %171, %cst_62 [1] : vector<8x32xf32> to vector<8xf32>
    %173 = vector.shape_cast %172 : vector<8xf32> to vector<8x1xf32>
    %cst_63 = arith.constant 3.200000e+01 : f32
    %174 = vector.broadcast %cst_63 : f32 to vector<8x1xf32>
    %175 = arith.divf %173, %174 : vector<8x1xf32>
    %176 = vector.broadcast %175 : vector<8x1xf32> to vector<8x32xf32>
    %177 = arith.subf %171, %176 : vector<8x32xf32>
    %178 = arith.mulf %177, %177 : vector<8x32xf32>
    %cst_64 = arith.constant dense<0.000000e+00> : vector<8xf32>
    %179 = vector.multi_reduction <add>, %178, %cst_64 [1] : vector<8x32xf32> to vector<8xf32>
    %180 = vector.shape_cast %179 : vector<8xf32> to vector<8x1xf32>
    %cst_65 = arith.constant 3.200000e+01 : f32
    %181 = vector.broadcast %cst_65 : f32 to vector<8x1xf32>
    %182 = arith.divf %180, %181 : vector<8x1xf32>
    %cst_66 = arith.constant 9.99999974E-6 : f32
    %183 = vector.broadcast %cst_66 : f32 to vector<8x1xf32>
    %184 = arith.addf %182, %183 : vector<8x1xf32>
    %185 = math.rsqrt %184 : vector<8x1xf32>
    %186 = vector.broadcast %185 : vector<8x1xf32> to vector<8x32xf32>
    %187 = arith.mulf %177, %186 : vector<8x32xf32>
    %188 = vector.broadcast %136 : vector<1x32xf32> to vector<8x32xf32>
    %189 = arith.mulf %187, %188 : vector<8x32xf32>
    %190 = vector.broadcast %137 : vector<1x32xf32> to vector<8x32xf32>
    %191 = arith.addf %189, %190 : vector<8x32xf32>
    %cst_67 = arith.constant dense<0.000000e+00> : vector<8x64xf32>
    %192 = tpu.matmul %191, %126, %cst_67 {dimension_numbers = #tpu.dot_dimension_numbers<[1], [0], [0], [1], [0, 0, 1, 1], [], []>} : vector<8x32xf32>, vector<32x64xf32>, vector<8x64xf32> -> vector<8x64xf32>
    %193 = vector.broadcast %134 : vector<1x64xf32> to vector<8x64xf32>
    %194 = arith.addf %192, %193 : vector<8x64xf32>
    %cst_68 = arith.constant 0.000000e+00 : f32
    %195 = vector.broadcast %cst_68 : f32 to vector<8x64xf32>
    %196 = arith.maximumf %194, %195 : vector<8x64xf32>
    %cst_69 = arith.constant dense<0.000000e+00> : vector<8x32xf32>
    %197 = tpu.matmul %196, %129, %cst_69 {dimension_numbers = #tpu.dot_dimension_numbers<[1], [0], [0], [1], [0, 0, 1, 1], [], []>} : vector<8x64xf32>, vector<64x32xf32>, vector<8x32xf32> -> vector<8x32xf32>
    %198 = vector.broadcast %135 : vector<1x32xf32> to vector<8x32xf32>
    %199 = arith.addf %197, %198 : vector<8x32xf32>
    %200 = arith.addf %191, %199 : vector<8x32xf32>
    %cst_70 = arith.constant dense<0.000000e+00> : vector<8xf32>
    %201 = vector.multi_reduction <add>, %200, %cst_70 [1] : vector<8x32xf32> to vector<8xf32>
    %202 = vector.shape_cast %201 : vector<8xf32> to vector<8x1xf32>
    %cst_71 = arith.constant 3.200000e+01 : f32
    %203 = vector.broadcast %cst_71 : f32 to vector<8x1xf32>
    %204 = arith.divf %202, %203 : vector<8x1xf32>
    %205 = vector.broadcast %204 : vector<8x1xf32> to vector<8x32xf32>
    %206 = arith.subf %200, %205 : vector<8x32xf32>
    %207 = arith.mulf %206, %206 : vector<8x32xf32>
    %cst_72 = arith.constant dense<0.000000e+00> : vector<8xf32>
    %208 = vector.multi_reduction <add>, %207, %cst_72 [1] : vector<8x32xf32> to vector<8xf32>
    %209 = vector.shape_cast %208 : vector<8xf32> to vector<8x1xf32>
    %cst_73 = arith.constant 3.200000e+01 : f32
    %210 = vector.broadcast %cst_73 : f32 to vector<8x1xf32>
    %211 = arith.divf %209, %210 : vector<8x1xf32>
    %cst_74 = arith.constant 9.99999974E-6 : f32
    %212 = vector.broadcast %cst_74 : f32 to vector<8x1xf32>
    %213 = arith.addf %211, %212 : vector<8x1xf32>
    %214 = math.rsqrt %213 : vector<8x1xf32>
    %215 = vector.broadcast %214 : vector<8x1xf32> to vector<8x32xf32>
    %216 = arith.mulf %206, %215 : vector<8x32xf32>
    %217 = vector.broadcast %138 : vector<1x32xf32> to vector<8x32xf32>
    %218 = arith.mulf %216, %217 : vector<8x32xf32>
    %219 = vector.broadcast %139 : vector<1x32xf32> to vector<8x32xf32>
    %220 = arith.addf %218, %219 : vector<8x32xf32>
    %c2_i32 = arith.constant 2 : i32
    %c0_75 = arith.constant 0 : index
    %c0_76 = arith.constant 0 : index
    %c0_77 = arith.constant 0 : index
    %221 = vector.load %arg8[%c0_75, %c0_76, %c0_77] : memref<1x8x32xf32, #tpu.memory_space<vmem>>, vector<1x8x32xf32>
    %222 = vector.shape_cast %221 : vector<1x8x32xf32> to vector<8x32xf32>
    %223 = vector.shape_cast %220 : vector<8x32xf32> to vector<1x8x32xf32>
    tpu.vector_store %arg8[%c0_75, %c0_76, %c0_77], %223 {strides = array<i32>} : memref<1x8x32xf32, #tpu.memory_space<vmem>>, vector<1x8x32xf32>,
    return
  }
  func.func @transform_0(%arg0: i32) -> (i32, i32, i32) {
    %c0_i32 = arith.constant 0 : i32
    %c0_i32_0 = arith.constant 0 : i32
    %c0_i32_1 = arith.constant 0 : i32
    return %arg0, %c0_i32, %c0_i32_0 : i32, i32, i32
  }
  func.func @transform_1(%arg0: i32) -> (i32, i32, i32, i32) {
    %c0_i32 = arith.constant 0 : i32
    %c0_i32_0 = arith.constant 0 : i32
    %c0_i32_1 = arith.constant 0 : i32
    %c0_i32_2 = arith.constant 0 : i32
    %c0_i32_3 = arith.constant 0 : i32
    return %c0_i32, %c0_i32_0, %c0_i32_1, %c0_i32_2 : i32, i32, i32, i32
  }
  func.func @transform_2(%arg0: i32) -> (i32, i32, i32, i32) {
    %c0_i32 = arith.constant 0 : i32
    %c0_i32_0 = arith.constant 0 : i32
    %c0_i32_1 = arith.constant 0 : i32
    %c0_i32_2 = arith.constant 0 : i32
    %c0_i32_3 = arith.constant 0 : i32
    return %c0_i32, %c0_i32_0, %c0_i32_1, %c0_i32_2 : i32, i32, i32, i32
  }
  func.func @transform_3(%arg0: i32) -> (i32, i32, i32, i32) {
    %c0_i32 = arith.constant 0 : i32
    %c0_i32_0 = arith.constant 0 : i32
    %c0_i32_1 = arith.constant 0 : i32
    %c0_i32_2 = arith.constant 0 : i32
    %c0_i32_3 = arith.constant 0 : i32
    return %c0_i32, %c0_i32_0, %c0_i32_1, %c0_i32_2 : i32, i32, i32, i32
  }
  func.func @transform_4(%arg0: i32) -> (i32, i32, i32) {
    %c0_i32 = arith.constant 0 : i32
    %c0_i32_0 = arith.constant 0 : i32
    %c0_i32_1 = arith.constant 0 : i32
    %c0_i32_2 = arith.constant 0 : i32
    return %c0_i32, %c0_i32_0, %c0_i32_1 : i32, i32, i32
  }
  func.func @transform_5(%arg0: i32) -> (i32, i32, i32) {
    %c0_i32 = arith.constant 0 : i32
    %c0_i32_0 = arith.constant 0 : i32
    %c0_i32_1 = arith.constant 0 : i32
    %c0_i32_2 = arith.constant 0 : i32
    return %c0_i32, %c0_i32_0, %c0_i32_1 : i32, i32, i32
  }
  func.func @transform_6(%arg0: i32) -> (i32, i32, i32) {
    %c0_i32 = arith.constant 0 : i32
    %c0_i32_0 = arith.constant 0 : i32
    %c0_i32_1 = arith.constant 0 : i32
    %c0_i32_2 = arith.constant 0 : i32
    return %c0_i32, %c0_i32_0, %c0_i32_1 : i32, i32, i32
  }
  func.func @transform_7(%arg0: i32) -> (i32, i32, i32) {
    %c0_i32 = arith.constant 0 : i32
    %c0_i32_0 = arith.constant 0 : i32
    %c0_i32_1 = arith.constant 0 : i32
    return %arg0, %c0_i32, %c0_i32_0 : i32, i32, i32
  }
}

</mosaic_0001>

<bundles_post_ra>
// kernel: tpu_custom_call.1
= control target key start
LH: loop header
LB: loop body
LE: loop exit
PB: predicated region body
PF: predicated region fallthrough
CT: control target
= control target key end

     0   :  { %12 = vsyncpa [#allocation3], 0  ;;  %s4820_s0 = inlined_call_operand.vmem [shape: f32[2,8,32], index: 0, kind: input, shape index: {}]   ;;  %s4821_s1 = inlined_call_operand.vmem [shape: f32[2,4,32,24], index: 1, kind: input, shape index: {}]   ;;  %s4822_s2 = inlined_call_operand.vmem [shape: f32[2,4,1,24], index: 2, kind: input, shape index: {}]   ;;  %s4823_s3 = inlined_call_operand.vmem [shape: f32[2,4,8,32], index: 3, kind: input, shape index: {}]   ;;  %s4824_s4 = inlined_call_operand.vmem [shape: f32[2,32,64], index: 4, kind: input, shape index: {}]   ;;  %s4825_s5 = inlined_call_operand.vmem [shape: f32[2,64,32], index: 5, kind: input, shape index: {}]   ;;  %s4826_s6 = inlined_call_operand.vmem [shape: f32[2,8,128], index: 6, kind: input, shape index: {}]   ;;  %s4827_s7 = inlined_call_operand.hbm [shape: f32[2,8,32], index: 7, kind: output, shape index: {}]  }
   0x1   :  { %14 = vsyncpa [#allocation3 + $0x1], 0  ;;  %s4166_s24 = smov 0   ;;  %s4168_s25 = smov 0  }
   0x2   :  { %s4170_s26 = smov 0   ;;  %s4172_s27 = smov 0  }
   0x3 LB: > { %s4187_s28 = sadd.s32 4294967295, %s4117_s27   ;;  %s3403_s29 = sadd.s32 4294967294, %s4117_s27   ;;  %s4117_s27 = sphi %s4172_s27, %s4833_s27   ;;  %s4113_s26 = sphi %s4170_s26, %s4832_s26   ;;  %s4109_s25 = sphi %s4168_s25, %s4831_s25   ;;  %s4105_s24 = sphi %s4166_s24, %s4830_s24  }
   0x4   : > { %s4191_s30 = sadd.s32 1, %s4117_s27   ;;  %s179_s8 = sadd.s32 1, %s4113_s26 }
   0x5   : > { %s176_s9 = ssub.s32 %s4117_s27, %s4191_s30  ;;  %p189_p0 = scmp.ne.s32.totalorder %s4113_s26, %s4109_s25 }
   0x6   : > { %p177_p1 = scmp.eq.s32.totalorder %s176_s9, 0  ;;  %p190_p2 = scmp.eq.s32.totalorder %s4187_s28, 1 }
   0x7   : > { %p195_p3 = scmp.ne.s32.totalorder %s4109_s25, %s4105_s24  ;;  %p196_p4 = scmp.eq.s32.totalorder %s3403_s29, 1 }
   0x8   : > { %s4202_s10 = scalar_select %p177_p1, %s4113_s26, %s179_s8  }
   0x9   : > { %p4204_p5 = por %p190_p2, %p189_p0  ;;  %p4208_p6 = por %p196_p4, %p195_p3 }
   0xa   : > { %p3406_p7 = scmp.ge.s32.totalorder %s4117_s27, 1  ;;  %p239_p8 = scmp.lt.s32.totalorder %s4117_s27, 3 }
   0xc   : > { %p240_p9 = pnand %p3406_p7, %p239_p8 }
   0xd   : > { %v281_v0 = vld [vmem:[%s4821_s1] sm:$0xff] (!%p240_p9)  ;;  %v282_v1 = vld [vmem:[%s4821_s1 + $0x8] sm:$0xff] (!%p240_p9)  ;;  %v4119_v3 = vmov (!%p240_p9), 0.0|0.0   ;;  %v283_v6 = vld [vmem:[%s4821_s1 + $0x10] sm:$0xff] (!%p240_p9)  ;;  %p270_p10 = scmp.lt.s32.totalorder (!%p240_p9), %s4187_s28, 1  ;;  %vm4120_vm0 = vmmov (!%p240_p9), 0   ;;  %v275_v47 = vlaneseq (!%p240_p9) }
   0xe   : > { %243 = sbr.rel (%p240_p9) target bundleno = 4778 (0x12aa), region = 48  ;;  %v285_v2 = vld [vmem:[%s4821_s1 + $0x20] sm:$0xff] (!%p240_p9)  ;;  %3886 = vmatprep.subr.bf16.mxu0 (!%p240_p9), %v4119_v3  ;;  %v3887_v4 = vpack.c.bf16 (!%p240_p9), %v282_v1, %v281_v0  ;;  %3892 = vmatprep.subr.bf16.mxu1 (!%p240_p9), %v4119_v3  ;;  %v286_v5 = vld [vmem:[%s4821_s1 + $0x28] sm:$0xff] (!%p240_p9)  ;;  %v284_v7 = vld [vmem:[%s4821_s1 + $0x18] sm:$0xff] (!%p240_p9)  ;;  %v4121_v9 = vmov (!%p240_p9), 0.0   ;;  %vm342_vm1 = vcmask (!%p240_p9), 261120  }
   0xf   : > { %v3893_v8 = vpack.c.bf16 (!%p240_p9), %v286_v5, %v285_v2  ;;  %3626 = vmatprep.mubr.msk.f32.mxu0 (!%p240_p9), %vm4120_vm0, %v4121_v9  ;;  %v287_v10 = vld [vmem:[%s4821_s1 + $0x30] sm:$0xff] (!%p240_p9)  ;;  %v288_v11 = vld [vmem:[%s4821_s1 + $0x38] sm:$0xff] (!%p240_p9)  ;;  %3637 = vmatprep.mubr.msk.f32.mxu1 (!%p240_p9), %vm4120_vm0, %v4121_v9  ;;  %v3890_v12 = vpack.c.bf16 (!%p240_p9), %v284_v7, %v283_v6  ;;  %v289_v14 = vld [vmem:[%s4821_s1 + $0x40] sm:$0xff] (!%p240_p9)  ;;  %s4122_s9 = smov (!%p240_p9), 120   ;;  %vm629_vm2 = vcmask (!%p240_p9), 64512   ;;  %v4351_v48 = vshrl.u32 (!%p240_p9), %v275_v47, 7 }
  0x10   : > { %3888 = vmatpush3.bf16.msra.mxu0 (!%p240_p9), %v3887_v4  ;;  %v3896_v13 = vpack.c.bf16 (!%p240_p9), %v288_v11, %v287_v10  ;;  %v290_v15 = vld [vmem:[%s4821_s1 + $0x48] sm:$0xff] (!%p240_p9)  ;;  %v293_v16 = vld [vmem:[%s4821_s1 + $0x60] sm:$0xff] (!%p240_p9)  ;;  %v291_v21 = vld [vmem:[%s4821_s1 + $0x50] sm:$0xff] (!%p240_p9)  ;;  %v278_v49 = vand.u32 (!%p240_p9), 127, %v275_v47  ;;  %v4123_v50 = vmov (!%p240_p9), -1e+30  }
  0x11   : > { %3889 = vmatprep.subr.bf16.mxu0 (!%p240_p9), %v4119_v3  ;;  %3894 = vmatpush3.bf16.msra.mxu1 (!%p240_p9), %v3893_v8  ;;  %v294_v17 = vld [vmem:[%s4821_s1 + $0x68] sm:$0xff] (!%p240_p9)  ;;  %v3899_v19 = vpack.c.bf16 (!%p240_p9), %v290_v15, %v289_v14  ;;  %v292_v22 = vld [vmem:[%s4821_s1 + $0x58] sm:$0xff] (!%p240_p9)  ;;  %v295_v23 = vld [vmem:[%s4821_s1 + $0x70] sm:$0xff] (!%p240_p9)  ;;  %s4124_s17 = smov (!%p240_p9), 112   ;;  %vm1706_vm4 = vcmask (!%p240_p9), 523264   ;;  %s267_s29 = sand.u32 (!%p240_p9), 1, %s4109_s25  }
  0x12   : > { %3895 = vmatprep.subr.bf16.mxu1 (!%p240_p9), %v4119_v3  ;;  %v3905_v20 = vpack.c.bf16 (!%p240_p9), %v294_v17, %v293_v16  ;;  %v296_v24 = vld [vmem:[%s4821_s1 + $0x78] sm:$0xff] (!%p240_p9)  ;;  %v3902_v25 = vpack.c.bf16 (!%p240_p9), %v292_v22, %v291_v21  ;;  %v3409_v27 = vld [vmem:[%s4822_s2] ss:$0 sm:$0xff] (!%p240_p9)  ;;  %v3410_v29 = vld [vmem:[%s4822_s2 + $0x1] ss:$0 sm:$0xff] (!%p240_p9)  ;;  %vm279_vm3 = vcmp.le.s32.totalorder (!%p240_p9), %v278_v49, %v4351_v48  ;;  %s3407_s8 = sshll.u32 (!%p240_p9), %s267_s29, 3 }
  0x13   : > { %v3908_v26 = vpack.c.bf16 (!%p240_p9), %v296_v24, %v295_v23  ;;  %v3411_v35 = vld [vmem:[%s4822_s2 + $0x2] ss:$0 sm:$0xff] (!%p240_p9)  ;;  %v3412_v37 = vld [vmem:[%s4822_s2 + $0x3] ss:$0 sm:$0xff] (!%p240_p9)  ;;  %v4354_v51 = vsel (!%p240_p9), %vm279_vm3, 0.0, %v4123_v50  ;;  %s269_s14 = scalar_lea.vmem (!%p240_p9), [#allocation2], %s3407_s8 }
  0x14   : > { %3891 = vmatpush3.bf16.msra.mxu0 (!%p240_p9), %v3890_v12 }
  0x15   : > { %s271_s15 = scalar_select %p270_p10, %s4187_s28, 1  ;;  %3897 = vmatpush3.bf16.msra.mxu1 %v3896_v13  ;;  %3898 = vmatprep.subr.bf16.mxu0 %v4119_v3 }
  0x16   : > { %3904 = vmatprep.subr.bf16.mxu1 %v4119_v3 }
  0x17   : > { %s3408_s20 = sshll.u32 %s271_s15, 3  ;;  %s3344_s15 = sshll.u32 %s269_s14, 4  ;;  %s4779_s15 = int_to_ptr.vmem [resolvable:$true] %s3344_s15 }
  0x18   : > { %s273_s13 = scalar_lea.vmem %s4820_s0, %s3408_s20 }
  0x19   : > { %v4263_v18 = vld [vmem:[%s273_s13] sm:$0xff]  ;;  %s3499_s13 = sshll.u32 %s4187_s28, 7  ;;  %s4125_s28 = smov [#allocation2]  }
  0x1a   : > { %3627 = vmatmul.mubr.msk.f32.vlgmr.msra.gmra.mrb[0].mxu0 %vm342_vm1, %v4263_v18  ;;  %3638 = vmatmul.mubr.msk.f32.vlgmr.msra.gmra.mrb[0].mxu1 %vm342_vm1, %v4263_v18  ;;  %s4777_s19 = scalar_lea.hbm %s4827_s7, %s3499_s13  ;;  %s4059_s20 = sshll.u32 %s4125_s28, 4  ;;  %s4060_s20 = int_to_ptr.vmem [resolvable:$false] %s4059_s20 }
  0x1b   : > { %3900 = vmatpush3.bf16.msra.mxu0 %v3899_v19  ;;  %3906 = vmatpush3.bf16.msra.mxu1 %v3905_v20  ;;  %s4061_s21 = scalar_lea.vmem %s4060_s20, 256  ;;  %p4062_p0 = scmp.lt.s32.totalorder %s4779_s15, %s4060_s20 }
  0x1c   : > { %3901 = vmatprep.subr.bf16.mxu0 %v4119_v3  ;;  %3648 = vmatprep.mubr.msk.f32.mxu0 %vm4120_vm0, %v4121_v9 }
  0x1d   : > { %3907 = vmatprep.subr.bf16.mxu1 %v4119_v3  ;;  %3659 = vmatprep.mubr.msk.f32.mxu1 %vm4120_vm0, %v4121_v9 }
  0x1f   : > { %3903 = vmatpush3.bf16.msra.mxu0 %v3902_v25  ;;  %3909 = vmatpush3.bf16.msra.mxu1 %v3908_v26 }
  0x20   : > { %3662 = vmatprep.subr.mxu0 %v4121_v9  ;;  %3677 = vmatprep.subr.mxu1 %v4121_v9 }
  0x22   : > { %3649 = vmatmul.mubr.msk.f32.vlgmr.msra.gmra.mrb[2].mxu0 %vm342_vm1, %v4263_v18  ;;  %3660 = vmatmul.mubr.msk.f32.vlgmr.msra.gmra.mrb[2].mxu1 %vm342_vm1, %v4263_v18 }
  0x23   : > { %3664 = vmatprep.mubr.msk.f32.mxu0 %vm4120_vm0, %v4121_v9  ;;  %3679 = vmatprep.mubr.msk.f32.mxu1 %vm4120_vm0, %v4121_v9 }
  0xed   : > { %v412_v28 = vpop.f32.mrb[0].mxu0  ;;  %v482_v32 = vpop.f32.mrb[0].mxu1 }
  0xee   : > { %v4305_v30 = vadd.f32 %v3409_v27, %v412_v28  ;;  %v3628_v31 = vpop.f32.mrb[1].mxu0  ;;  %v3639_v33 = vpop.f32.mrb[1].mxu1  ;;  %v4307_v34 = vadd.f32 %v3410_v29, %v482_v32 }
  0xf0   : > { %627 = vrot.lane.b32.xlu0 %v4305_v30, %s4122_s9 }
  0xf4   : > { %705 = vrot.lane.b32.xlu0 %v4307_v34, %s4122_s9 }
  0xf5   : > { %v552_v36 = vpop.f32.mrb[2].mxu0  ;;  %v622_v40 = vpop.f32.mrb[2].mxu1 }
  0xf6   : > { %v4319_v38 = vadd.f32 %v3411_v35, %v552_v36  ;;  %v3650_v39 = vpop.f32.mrb[3].mxu0  ;;  %v3661_v41 = vpop.f32.mrb[3].mxu1  ;;  %v4321_v42 = vadd.f32 %v3412_v37, %v622_v40 }
  0xf8   : > { %782 = vrot.lane.b32.xlu1 %v4319_v38, %s4122_s9 }
  0xfc   : > { %859 = vrot.lane.b32.xlu1 %v4321_v42, %s4122_s9 }
 0x162   : > { %v628_v43 = vpop.permute.xlu0 %627 }
 0x163   : > { %3663 = vmatpush3.xpose.msk.msra.mxu0 %vm629_vm2, %v628_v43 }
 0x164   : > { %3667 = vmatprep.subr.mxu0 %v4121_v9 }
 0x166   : > { %3665 = vmatmul.mubr.msk.f32.vlgmr.msra.gmra.mrb[4].mxu0 %vm629_vm2, %v4305_v30  ;;  %v706_v44 = vpop.permute.xlu0 %705 }
 0x167   : > { %3668 = vmatpush3.xpose.msk.msra.mxu0 %vm629_vm2, %v706_v44  ;;  %3669 = vmatprep.mubr.msk.f32.mxu0 %vm4120_vm0, %v4121_v9 }
 0x168   : > { %3672 = vmatprep.subr.mxu0 %v4121_v9 }
 0x16a   : > { %3670 = vmatmul.mubr.msk.f32.vlgmr.msra.gmra.mrb[6].mxu0 %vm629_vm2, %v4307_v34  ;;  %v783_v45 = vpop.permute.xlu1 %782 }
 0x16b   : > { %3673 = vmatpush3.xpose.msk.msra.mxu0 %vm629_vm2, %v783_v45  ;;  %3674 = vmatprep.mubr.msk.f32.mxu0 %vm4120_vm0, %v4121_v9 }
 0x16c   : > { %3682 = vmatprep.subr.mxu0 %v4121_v9 }
 0x16e   : > { %3675 = vmatmul.mubr.msk.f32.vlgmr.msra.gmra.mrb[8].mxu0 %vm629_vm2, %v4319_v38  ;;  %v860_v46 = vpop.permute.xlu1 %859 }
 0x16f   : > { %3678 = vmatpush3.xpose.msk.msra.mxu1 %vm629_vm2, %v860_v46  ;;  %3684 = vmatprep.mubr.msk.f32.mxu0 %vm4120_vm0, %v4121_v9 }
 0x170   : > { %3687 = vmatprep.subr.mxu1 %v4121_v9 }
 0x172   : > { %3680 = vmatmul.mubr.msk.f32.vlgmr.msra.gmra.mrb[4].mxu1 %vm629_vm2, %v4321_v42 }
 0x173   : > { %3689 = vmatprep.mubr.msk.f32.mxu1 %vm4120_vm0, %v4121_v9 }
 0x239   : > { %v700_v52 = vpop.f32.mrb[4].mxu0 }
 0x23a   : > { %v701_v53 = vadd.f32 %v700_v52, %v4354_v51  ;;  %v3666_v54 = vpop.f32.mrb[5].mxu0 }
 0x23c   : > { %v935_v55 = vsel %vm629_vm2, %v701_v53, -inf }
 0x23d   : > { %936 = vmax.xlane.f32.xlu0 %v935_v55  ;;  %v777_v56 = vpop.f32.mrb[6].mxu0 }
 0x23e   : > { %v778_v57 = vadd.f32 %v777_v56, %v4354_v51  ;;  %v3671_v58 = vpop.f32.mrb[7].mxu0 }
 0x23f   : > { %v302_v58 = vld [vmem:[%s4823_s3 + $0x8] sm:$0xff] }
 0x240   : > { %v938_v59 = vsel %vm629_vm2, %v778_v57, -inf }
 0x241   : > { %939 = vmax.xlane.f32.xlu1 %v938_v59  ;;  %v854_v60 = vpop.f32.mrb[8].mxu0  ;;  %v303_v59 = vld [vmem:[%s4823_s3 + $0x10] sm:$0xff] }
 0x242   : > { %v855_v61 = vadd.f32 %v854_v60, %v4354_v51  ;;  %v3676_v62 = vpop.f32.mrb[9].mxu0 }
 0x243   : > { %v304_v62 = vld [vmem:[%s4823_s3 + $0x18] sm:$0xff] }
 0x244   : > { %v941_v63 = vsel %vm629_vm2, %v855_v61, -inf }
 0x245   : > { %v931_v0 = vpop.f32.mrb[4].mxu1  ;;  %942 = vmax.xlane.f32.xlu0 %v941_v63 }
 0x246   : > { %v932_v1 = vadd.f32 %v931_v0, %v4354_v51  ;;  %v3681_v2 = vpop.f32.mrb[5].mxu1 }
 0x248   : > { %v944_v4 = vsel %vm629_vm2, %v932_v1, -inf }
 0x249   : > { %945 = vmax.xlane.f32.xlu0 %v944_v4 }
 0x252   : > { %991 = vrot.lane.b32.xlu1 %v4305_v30, %s4124_s17 }
 0x2ca   : > { %v937_v5 = vpop.xlane.xlu0 %936 }
 0x2cb   : > { %v947_v6 = vsub.f32 %v701_v53, %v937_v5 }
 0x2cd   : > { %v951_v7 = vmul.f32 1.442695, %v947_v6 }
 0x2ce   : > { %v940_v8 = vpop.xlane.xlu1 %939 }
 0x2cf   : > { %4015 = vpow2.f32 %v951_v7  ;;  %v948_v10 = vsub.f32 %v778_v57, %v940_v8  ;;  %v301_v57 = vld [vmem:[%s4823_s3] sm:$0xff] }
 0x2d1   : > { %v953_v11 = vmul.f32 1.442695, %v948_v10 }
 0x2d2   : > { %v992_v12 = vpop.permute.xlu1 %991  ;;  %v943_v13 = vpop.xlane.xlu0 %942 }
 0x2d3   : > { %4017 = vpow2.f32 %v953_v11  ;;  %v949_v14 = vsub.f32 %v855_v61, %v943_v13  ;;  %3683 = vmatpush3.msra.mxu0 %v992_v12 }
 0x2d4   : > { %3692 = vmatprep.subr.mxu0 %v4121_v9 }
 0x2d5   : > { %v955_v15 = vmul.f32 1.442695, %v949_v14 }
 0x2d6   : > { %v946_v16 = vpop.xlane.xlu0 %945 }
 0x2d7   : > { %4019 = vpow2.f32 %v955_v15  ;;  %v950_v17 = vsub.f32 %v932_v1, %v946_v16  ;;  %v1596_v15 = vsub.s32 0, %v4351_v48 }
 0x2d9   : > { %v4016_v19 = vpop.eup %4015  ;;  %v957_v20 = vmul.f32 1.442695, %v950_v17 }
 0x2da   : > { %v959_v21 = vsel %vm629_vm2, %v4016_v19, 0.0 }
 0x2db   : > { %4021 = vpow2.f32 %v957_v20  ;;  %960 = vadd.xlane.f32.xlu1 %v959_v21 }
 0x2dd   : > { %v4018_v22 = vpop.eup %4017 }
 0x2de   : > { %v962_v23 = vsel %vm629_vm2, %v4018_v22, 0.0 }
 0x2df   : > { %963 = vadd.xlane.f32.xlu0 %v962_v23 }
 0x2e1   : > { %v4020_v24 = vpop.eup %4019 }
 0x2e2   : > { %v965_v25 = vsel %vm629_vm2, %v4020_v24, 0.0 }
 0x2e3   : > { %966 = vadd.xlane.f32.xlu1 %v965_v25 }
 0x2e5   : > { %v4022_v26 = vpop.eup %4021 }
 0x2e6   : > { %v968_v27 = vsel %vm629_vm2, %v4022_v26, 0.0 }
 0x2e7   : > { %969 = vadd.xlane.f32.xlu0 %v968_v27 }
 0x2f4   : > { %1143 = vrot.lane.b32.xlu1 %v4319_v38, %s4124_s17 }
 0x2f8   : > { %1219 = vrot.lane.b32.xlu1 %v4321_v42, %s4124_s17 }
 0x2fd   : > { %1067 = vrot.lane.b32.xlu0 %v4307_v34, %s4124_s17 }
 0x368   : > { %v961_v28 = vpop.xlane.xlu1 %960 }
 0x369   : > { %4023 = vrcp.f32 %v961_v28 }
 0x36c   : > { %v964_v29 = vpop.xlane.xlu0 %963 }
 0x36d   : > { %4025 = vrcp.f32 %v964_v29 }
 0x370   : > { %v967_v30 = vpop.xlane.xlu1 %966 }
 0x371   : > { %4027 = vrcp.f32 %v967_v30 }
 0x373   : > { %v4024_v31 = vpop.eup %4023 }
 0x374   : > { %v975_v32 = vmul.f32 %v4024_v31, %v961_v28  ;;  %v970_v33 = vpop.xlane.xlu0 %969  ;;  %v1144_v42 = vpop.permute.xlu1 %1143 }
 0x375   : > { %4029 = vrcp.f32 %v970_v33 }
 0x376   : > { %v979_v35 = vsub.f32 2.0, %v975_v32 }
 0x377   : > { %v4026_v36 = vpop.eup %4025 }
 0x378   : > { %v983_v37 = vmul.f32 %v4024_v31, %v979_v35  ;;  %v976_v38 = vmul.f32 %v4026_v36, %v964_v29  ;;  %v1068_v39 = vpop.permute.xlu0 %1067  ;;  %v1220_v52 = vpop.permute.xlu1 %1219  ;;  %v305_v35 = vld [vmem:[%s4824_s4] sm:$0xff] }
 0x379   : > { %3688 = vmatpush3.msra.mxu1 %v1068_v39 }
 0x37a   : > { %v987_v40 = vmul.f32 %v4016_v19, %v983_v37  ;;  %v980_v41 = vsub.f32 2.0, %v976_v38  ;;  %3697 = vmatprep.subr.mxu1 %v4121_v9  ;;  %v4427_v19 = vld [vmem:[%s4826_s6] sm:$0xff]  ;;  %v308_v38 = vld [vmem:[%s4824_s4 + $0x18] sm:$0xff] }
 0x37b   : > { %v4028_v34 = vpop.eup %4027 }
 0x37c   : > { %v984_v43 = vmul.f32 %v4026_v36, %v980_v41  ;;  %v977_v44 = vmul.f32 %v4028_v34, %v967_v30  ;;  %3685 = vmatmul.mubr.msk.f32.vlgmr.msra.gmra.mrb[10].mxu0 %vm629_vm2, %v987_v40  ;;  %v306_v36 = vld [vmem:[%s4824_s4 + $0x8] sm:$0xff]  ;;  %v309_v40 = vld [vmem:[%s4825_s5] sm:$0xff] }
 0x37d   : > { %3693 = vmatpush3.msra.mxu0 %v1144_v42  ;;  %3694 = vmatprep.mubr.msk.f32.mxu0 %vm4120_vm0, %v4121_v9  ;;  %v3911_v37 = vpack.c.bf16 %v306_v36, %v305_v35  ;;  %v310_v41 = vld [vmem:[%s4825_s5 + $0x8] sm:$0xff]  ;;  %v311_v42 = vld [vmem:[%s4825_s5 + $0x10] sm:$0xff] }
 0x37e   : > { %v988_v45 = vmul.f32 %v4018_v22, %v984_v43  ;;  %v981_v46 = vsub.f32 2.0, %v977_v44  ;;  %3702 = vmatprep.subr.mxu0 %v4121_v9  ;;  %v1597_v22 = vrot.slane %v4427_v19, %v1596_v15  ;;  %v312_v43 = vld [vmem:[%s4825_s5 + $0x18] sm:$0xff] }
 0x37f   : > { %v4030_v47 = vpop.eup %4029  ;;  %v3920_v44 = vpack.c.bf16 %v312_v43, %v311_v42  ;;  %v3439_v43 = vld [vmem:[%s4821_s1 + $0xa0] sm:$0xff] }
 0x380   : > { %v985_v49 = vmul.f32 %v4028_v34, %v981_v46  ;;  %v978_v50 = vmul.f32 %v4030_v47, %v970_v33  ;;  %3690 = vmatmul.mubr.msk.f32.vlgmr.msra.gmra.mrb[6].mxu1 %vm629_vm2, %v988_v45  ;;  %v3917_v34 = vpack.c.bf16 %v310_v41, %v309_v40  ;;  %v313_v45 = vld [vmem:[%s4825_s5 + $0x20] sm:$0xff]  ;;  %v314_v46 = vld [vmem:[%s4825_s5 + $0x28] sm:$0xff] }
 0x381   : > { %3698 = vmatpush3.msra.mxu1 %v1220_v52  ;;  %3699 = vmatprep.mubr.msk.f32.mxu1 %vm4120_vm0, %v4121_v9 }
 0x382   : > { %v989_v53 = vmul.f32 %v4020_v24, %v985_v49  ;;  %v982_v54 = vsub.f32 2.0, %v978_v50  ;;  %3707 = vmatprep.subr.mxu1 %v4121_v9 }
 0x384   : > { %v986_v55 = vmul.f32 %v4030_v47, %v982_v54  ;;  %3695 = vmatmul.mubr.msk.f32.vlgmr.msra.gmra.mrb[12].mxu0 %vm629_vm2, %v989_v53  ;;  %v3923_v47 = vpack.c.bf16 %v314_v46, %v313_v45  ;;  %v1616_v53 = vsub.s32 3, %v4351_v48  ;;  %v1621_v54 = vsub.s32 4, %v4351_v48 }
 0x385   : > { %3704 = vmatprep.mubr.msk.f32.mxu0 %vm4120_vm0, %v4121_v9  ;;  %3703 = vmatpush3.msra.mxu0 %v301_v57 }
 0x386   : > { %v990_v56 = vmul.f32 %v4022_v26, %v986_v55  ;;  %3712 = vmatprep.subr.mxu0 %v4121_v9  ;;  %v1617_v55 = vrot.slane %v4427_v19, %v1616_v53 }
 0x388   : > { %3700 = vmatmul.mubr.msk.f32.vlgmr.msra.gmra.mrb[8].mxu1 %vm629_vm2, %v990_v56 }
 0x389   : > { %3709 = vmatprep.mubr.msk.f32.mxu1 %vm4120_vm0, %v4121_v9  ;;  %3708 = vmatpush3.msra.mxu1 %v302_v58  ;;  %v1622_v58 = vrot.slane %v4427_v19, %v1621_v54 }
 0x38a   : > { %3717 = vmatprep.subr.mxu1 %v4121_v9 }
 0x44f   : > { %v1063_v60 = vpop.f32.mrb[10].mxu0 }
 0x450   : > { %v3686_v61 = vpop.f32.mrb[11].mxu0  ;;  %3705 = vmatmul.mubr.msk.f32.vlgmr.msra.gmra.mrb[14].mxu0 %vm629_vm2, %v1063_v60 }
 0x451   : > { %3713 = vmatpush3.msra.mxu0 %v303_v59  ;;  %3714 = vmatprep.mubr.msk.f32.mxu0 %vm4120_vm0, %v4121_v9  ;;  %v315_v61 = vld [vmem:[%s4825_s5 + $0x30] sm:$0xff] }
 0x452   : > { %3910 = vmatprep.subr.bf16.mxu0 %v4119_v3 }
 0x453   : > { %v1139_v63 = vpop.f32.mrb[6].mxu1 }
 0x454   : > { %v3691_v0 = vpop.f32.mrb[7].mxu1  ;;  %3710 = vmatmul.mubr.msk.f32.vlgmr.msra.gmra.mrb[10].mxu1 %vm629_vm2, %v1139_v63 }
 0x455   : > { %3718 = vmatpush3.msra.mxu1 %v304_v62  ;;  %3719 = vmatprep.mubr.msk.f32.mxu1 %vm4120_vm0, %v4121_v9  ;;  %v316_v62 = vld [vmem:[%s4825_s5 + $0x38] sm:$0xff]  ;;  %v1626_v0 = vsub.s32 1, %v4351_v48 }
 0x456   : > { %3916 = vmatprep.subr.bf16.mxu1 %v4119_v3  ;;  %v3926_v63 = vpack.c.bf16 %v316_v62, %v315_v61 }
 0x457   : > { %v1215_v1 = vpop.f32.mrb[12].mxu0 }
 0x458   : > { %v3696_v2 = vpop.f32.mrb[13].mxu0  ;;  %3715 = vmatmul.mubr.msk.f32.vlgmr.msra.gmra.mrb[16].mxu0 %vm629_vm2, %v1215_v1  ;;  %v1627_v1 = vrot.slane %v4427_v19, %v1626_v0 }
 0x459   : > { %3730 = vmatprep.mubr.msk.f32.mxu0 %vm4120_vm0, %v4121_v9  ;;  %3912 = vmatpush3.bf16.msra.mxu0 %v3911_v37 }
 0x45a   : > { %3913 = vmatprep.subr.bf16.mxu0 %v4119_v3 }
 0x45b   : > { %v1291_v4 = vpop.f32.mrb[8].mxu1 }
 0x45c   : > { %v3701_v5 = vpop.f32.mrb[9].mxu1  ;;  %3720 = vmatmul.mubr.msk.f32.vlgmr.msra.gmra.mrb[12].mxu1 %vm629_vm2, %v1291_v4 }
 0x45d   : > { %3749 = vmatprep.mubr.msk.f32.mxu1 %vm4120_vm0, %v4121_v9  ;;  %3918 = vmatpush3.bf16.msra.mxu1 %v3917_v34 }
 0x45e   : > { %3919 = vmatprep.subr.bf16.mxu1 %v4119_v3 }
 0x461   : > { %3921 = vmatpush3.bf16.msra.mxu1 %v3920_v44  ;;  %v3440_v44 = vld [vmem:[%s4821_s1 + $0xa8] sm:$0xff] }
 0x462   : > { %3922 = vmatprep.subr.bf16.mxu1 %v4119_v3  ;;  %v3935_v46 = vpack.c.bf16 %v3440_v44, %v3439_v43 }
 0x465   : > { %3924 = vmatpush3.bf16.msra.mxu1 %v3923_v47 }
 0x466   : > { %3925 = vmatprep.subr.bf16.mxu1 %v4119_v3 }
 0x469   : > { %3927 = vmatpush3.bf16.msra.mxu1 %v3926_v63 }
 0x46a   : > { %3940 = vmatprep.subr.bf16.mxu1 %v4119_v3 }
 0x523   : > { %v1364_v6 = vpop.f32.mrb[14].mxu0 }
 0x524   : > { %v3706_v7 = vpop.f32.mrb[15].mxu0  ;;  %v1587_v10 = vsel %vm342_vm1, %v1364_v6, 0.0 }
 0x525   : > { %v1704_v7 = vsub.s32 2, %v4351_v48 }
 0x527   : > { %v1437_v8 = vpop.f32.mrb[10].mxu1 }
 0x528   : > { %v1588_v11 = vsel %vm342_vm1, %v1437_v8, 0.0  ;;  %v3711_v12 = vpop.f32.mrb[11].mxu1  ;;  %v1705_v8 = vrot.slane %v4427_v19, %v1704_v7 }
 0x529   : > { %v1589_v13 = vadd.f32 %v1588_v11, %v1587_v10 }
 0x52b   : > { %v1510_v14 = vpop.f32.mrb[16].mxu0 }
 0x52c   : > { %v1590_v16 = vsel %vm342_vm1, %v1510_v14, 0.0  ;;  %v3716_v17 = vpop.f32.mrb[17].mxu0 }
 0x52d   : > { %v1591_v20 = vadd.f32 %v1590_v16, %v1589_v13 }
 0x52f   : > { %v1583_v21 = vpop.f32.mrb[12].mxu1 }
 0x530   : > { %v1592_v23 = vsel %vm342_vm1, %v1583_v21, 0.0  ;;  %v3721_v24 = vpop.f32.mrb[13].mxu1 }
 0x531   : > { %v1593_v25 = vadd.f32 %v1592_v23, %v1591_v20  ;;  %v3435_v23 = vld [vmem:[%s4821_s1 + $0x80] sm:$0xff]  ;;  %v3436_v24 = vld [vmem:[%s4821_s1 + $0x88] sm:$0xff] }
 0x533   : > { %v1598_v26 = vadd.f32 %v1597_v22, %v1593_v25  ;;  %v3929_v25 = vpack.c.bf16 %v3436_v24, %v3435_v23 }
 0x535   : > { %v1599_v27 = vadd.f32 %v1598_v26, %v4263_v18  ;;  %v307_v18 = vld [vmem:[%s4824_s4 + $0x10] sm:$0xff]  ;;  %v3443_v26 = vld [vmem:[%s4821_s1 + $0xc0] sm:$0xff] }
 0x536   : > { %v3914_v39 = vpack.c.bf16 %v308_v38, %v307_v18  ;;  %v1796_v38 = vsub.s32 5, %v4351_v48 }
 0x537   : > { %v1600_v28 = vsel %vm342_vm1, %v1599_v27, 0.0 }
 0x538   : > { %1601 = vadd.xlane.f32.xlu0 %v1600_v28  ;;  %3915 = vmatpush3.bf16.msra.mxu0 %v3914_v39  ;;  %v1801_v39 = vsub.s32 6, %v4351_v48  ;;  %v1797_v40 = vrot.slane %v4427_v19, %v1796_v38 }
 0x539   : > { %3928 = vmatprep.subr.bf16.mxu0 %v4119_v3 }
 0x53a   : > { %v1802_v34 = vrot.slane %v4427_v19, %v1801_v39  ;;  %v3442_v19 = vld [vmem:[%s4821_s1 + $0xb8] sm:$0xff] }
 0x5c5   : > { %v1602_v29 = vpop.xlane.xlu0 %1601 }
 0x5c6   : > { %v1604_v30 = vmul.f32 0.03125, %v1602_v29  ;;  %v3437_v29 = vld [vmem:[%s4821_s1 + $0x90] sm:$0xff] }
 0x5c8   : > { %v1605_v31 = vsub.f32 %v1599_v27, %v1604_v30  ;;  %v3444_v27 = vld [vmem:[%s4821_s1 + $0xc8] sm:$0xff]  ;;  %v3438_v30 = vld [vmem:[%s4821_s1 + $0x98] sm:$0xff] }
 0x5c9   : > { %v3941_v28 = vpack.c.bf16 %v3444_v27, %v3443_v26 }
 0x5ca   : > { %v1606_v32 = vmul.f32 %v1605_v31, %v1605_v31 }
 0x5cc   : > { %v1607_v33 = vsel %vm342_vm1, %v1606_v32, 0.0  ;;  %v3932_v32 = vpack.c.bf16 %v3438_v30, %v3437_v29 }
 0x5cd   : > { %1608 = vadd.xlane.f32.xlu1 %v1607_v33  ;;  %v3446_v33 = vld [vmem:[%s4821_s1 + $0xd8] sm:$0xff] }
 0x65a   : > { %v1609_v49 = vpop.xlane.xlu1 %1608 }
 0x65b   : > { %v1610_v50 = vmul.f32 0.03125, %v1609_v49  ;;  %v3441_v49 = vld [vmem:[%s4821_s1 + $0xb0] sm:$0xff] }
 0x65d   : > { %v1611_v52 = vadd.f32 1e-05, %v1610_v50  ;;  %v3938_v50 = vpack.c.bf16 %v3442_v19, %v3441_v49 }
 0x65f   : > { %4031 = vrsqrt.f32 %v1611_v52  ;;  %v3447_v52 = vld [vmem:[%s4821_s1 + $0xe0] sm:$0xff] }
 0x669   : > { %v4032_v56 = vpop.eup %4031 }
 0x66a   : > { %v1613_v57 = vmul.f32 %v4032_v56, %v1605_v31  ;;  %v3445_v31 = vld [vmem:[%s4821_s1 + $0xd0] sm:$0xff] }
 0x66b   : > { %v3944_v35 = vpack.c.bf16 %v3446_v33, %v3445_v31 }
 0x66c   : > { %v1618_v59 = vmul.f32 %v1617_v55, %v1613_v57  ;;  %v3448_v55 = vld [vmem:[%s4821_s1 + $0xe8] sm:$0xff]  ;;  %v3449_v57 = vld [vmem:[%s4821_s1 + $0xf0] sm:$0xff] }
 0x66d   : > { %v3947_v56 = vpack.c.bf16 %v3448_v55, %v3447_v52 }
 0x66e   : > { %v1623_v60 = vadd.f32 %v1622_v58, %v1618_v59  ;;  %v3450_v58 = vld [vmem:[%s4821_s1 + $0xf8] sm:$0xff] }
 0x66f   : > { %v3950_v59 = vpack.c.bf16 %v3450_v58, %v3449_v57 }
 0x670   : > { %3731 = vmatmul.mubr.msk.f32.vlgmr.msra.gmra.mrb[18].mxu0 %vm342_vm1, %v1623_v60 }
 0x671   : > { %3760 = vmatprep.mubr.msk.f32.mxu0 %vm4120_vm0, %v4121_v9  ;;  %3930 = vmatpush3.bf16.msra.mxu0 %v3929_v25 }
 0x672   : > { %3931 = vmatprep.subr.bf16.mxu0 %v4119_v3 }
 0x675   : > { %3933 = vmatpush3.bf16.msra.mxu0 %v3932_v32 }
 0x676   : > { %3934 = vmatprep.subr.bf16.mxu0 %v4119_v3 }
 0x743   : > { %v1697_v2 = vpop.f32.mrb[18].mxu0 }
 0x744   : > { %v1698_v4 = vadd.f32 %v1697_v2, %v1627_v1  ;;  %v3732_v5 = vpop.f32.mrb[19].mxu0 }
 0x746   : > { %v1701_v6 = vmax.f32 %v1698_v4, 0.0  ;;  %v3474_v4 = vld [vmem:[%s4822_s2 + $0x6] ss:$0 sm:$0xff] }
 0x748   : > { %3750 = vmatmul.mubr.msk.f32.vlgmr.msra.gmra.mrb[14].mxu1 %vm1706_vm4, %v1701_v6  ;;  %v3473_v6 = vld [vmem:[%s4822_s2 + $0x5] ss:$0 sm:$0xff] }
 0x749   : > { %3782 = vmatprep.mubr.msk.f32.mxu1 %vm4120_vm0, %v4121_v9  ;;  %3942 = vmatpush3.bf16.msra.mxu1 %v3941_v28 }
 0x74a   : > { %3943 = vmatprep.subr.bf16.mxu1 %v4119_v3 }
 0x74d   : > { %3945 = vmatpush3.bf16.msra.mxu1 %v3944_v35 }
 0x74e   : > { %3796 = vmatprep.subr.mxu1 %v4121_v9 }
 0x81b   : > { %v1776_v10 = vpop.f32.mrb[14].mxu1 }
 0x81c   : > { %v1777_v11 = vadd.f32 %v1776_v10, %v1705_v8  ;;  %v3751_v12 = vpop.f32.mrb[15].mxu1 }
 0x81d   : > { %v3475_v12 = vld [vmem:[%s4822_s2 + $0x7] ss:$0 sm:$0xff] }
 0x81e   : > { %v1780_v13 = vadd.f32 %v1777_v11, %v1623_v60  ;;  %v3472_v60 = vld [vmem:[%s4822_s2 + $0x4] ss:$0 sm:$0xff] }
 0x820   : > { %v1781_v14 = vsel %vm342_vm1, %v1780_v13, 0.0 }
 0x821   : > { %1782 = vadd.xlane.f32.xlu0 %v1781_v14 }
 0x8ae   : > { %v1783_v16 = vpop.xlane.xlu0 %1782 }
 0x8af   : > { %v1784_v17 = vmul.f32 0.03125, %v1783_v16 }
 0x8b1   : > { %v1785_v20 = vsub.f32 %v1780_v13, %v1784_v17 }
 0x8b3   : > { %v1786_v21 = vmul.f32 %v1785_v20, %v1785_v20 }
 0x8b5   : > { %v1787_v22 = vsel %vm342_vm1, %v1786_v21, 0.0 }
 0x8b6   : > { %1788 = vadd.xlane.f32.xlu0 %v1787_v22 }
 0x943   : > { %v1789_v36 = vpop.xlane.xlu0 %1788 }
 0x944   : > { %v1790_v37 = vmul.f32 0.03125, %v1789_v36 }
 0x946   : > { %v1791_v18 = vadd.f32 1e-05, %v1790_v37 }
 0x948   : > { %4033 = vrsqrt.f32 %v1791_v18 }
 0x952   : > { %v4034_v41 = vpop.eup %4033 }
 0x953   : > { %v1793_v42 = vmul.f32 %v4034_v41, %v1785_v20 }
 0x955   : > { %v1798_v45 = vmul.f32 %v1797_v40, %v1793_v42 }
 0x957   : > { %v4544_v47 = vadd.f32 %v1802_v34, %v1798_v45 }
 0x959   : > { %3761 = vmatmul.mubr.msk.f32.vlgmr.msra.gmra.mrb[20].mxu0 %vm342_vm1, %v4544_v47  ;;  %3783 = vmatmul.mubr.msk.f32.vlgmr.msra.gmra.mrb[16].mxu1 %vm342_vm1, %v4544_v47 }
 0x95a   : > { %3936 = vmatpush3.bf16.msra.mxu0 %v3935_v46  ;;  %3771 = vmatprep.mubr.msk.f32.mxu0 %vm4120_vm0, %v4121_v9 }
 0x95b   : > { %3937 = vmatprep.subr.bf16.mxu0 %v4119_v3  ;;  %3798 = vmatprep.mubr.msk.f32.mxu1 %vm4120_vm0, %v4121_v9 }
 0x95e   : > { %3939 = vmatpush3.bf16.msra.mxu0 %v3938_v50 }
 0x95f   : > { %3946 = vmatprep.subr.bf16.mxu0 %v4119_v3 }
 0x961   : > { %3772 = vmatmul.mubr.msk.f32.vlgmr.msra.gmra.mrb[22].mxu0 %vm342_vm1, %v4544_v47 }
 0x962   : > { %3948 = vmatpush3.bf16.msra.mxu0 %v3947_v56  ;;  %3793 = vmatprep.mubr.msk.f32.mxu0 %vm4120_vm0, %v4121_v9 }
 0x963   : > { %3949 = vmatprep.subr.bf16.mxu0 %v4119_v3 }
 0x966   : > { %3951 = vmatpush3.bf16.msra.mxu0 %v3950_v59 }
 0x967   : > { %3806 = vmatprep.subr.mxu0 %v4121_v9 }
 0x969   : > { %3794 = vmatmul.mubr.msk.f32.vlgmr.msra.gmra.mrb[24].mxu0 %vm342_vm1, %v4544_v47 }
 0x96a   : > { %3808 = vmatprep.mubr.msk.f32.mxu0 %vm4120_vm0, %v4121_v9 }
 0xa2c   : > { %v1940_v61 = vpop.f32.mrb[20].mxu0  ;;  %v2080_v62 = vpop.f32.mrb[16].mxu1 }
 0xa2d   : > { %v1941_v63 = vadd.f32 %v3472_v60, %v1940_v61  ;;  %v3762_v1 = vpop.f32.mrb[21].mxu0  ;;  %v3784_v2 = vpop.f32.mrb[17].mxu1  ;;  %v4591_v5 = vadd.f32 %v3474_v4, %v2080_v62 }
 0xa2f   : > { %2155 = vrot.lane.b32.xlu1 %v1941_v63, %s4122_s9 }
 0xa33   : > { %2309 = vrot.lane.b32.xlu1 %v4591_v5, %s4122_s9 }
 0xa34   : > { %v2010_v8 = vpop.f32.mrb[22].mxu0 }
 0xa35   : > { %v4598_v10 = vadd.f32 %v3473_v6, %v2010_v8  ;;  %v3773_v11 = vpop.f32.mrb[23].mxu0 }
 0xa37   : > { %2232 = vrot.lane.b32.xlu0 %v4598_v10, %s4122_s9 }
 0xa3c   : > { %v2150_v13 = vpop.f32.mrb[24].mxu0 }
 0xa3d   : > { %v4605_v14 = vadd.f32 %v3475_v12, %v2150_v13  ;;  %v3795_v16 = vpop.f32.mrb[25].mxu0 }
 0xa3f   : > { %2386 = vrot.lane.b32.xlu1 %v4605_v14, %s4122_s9  ;;  %s3331_s9 = scalar_lea.sflag [#allocation3], %s267_s29 }
 0xaa1   : > { %v2156_v17 = vpop.permute.xlu1 %2155 }
 0xaa2   : > { %3797 = vmatpush3.xpose.msk.msra.mxu1 %vm629_vm2, %v2156_v17 }
 0xaa3   : > { %3801 = vmatprep.subr.mxu1 %v4121_v9 }
 0xaa5   : > { %3799 = vmatmul.mubr.msk.f32.vlgmr.msra.gmra.mrb[18].mxu1 %vm629_vm2, %v1941_v63  ;;  %v2310_v20 = vpop.permute.xlu1 %2309 }
 0xaa6   : > { %3807 = vmatpush3.xpose.msk.msra.mxu0 %vm629_vm2, %v2310_v20  ;;  %3803 = vmatprep.mubr.msk.f32.mxu1 %vm4120_vm0, %v4121_v9 }
 0xaa7   : > { %3816 = vmatprep.subr.mxu0 %v4121_v9 }
 0xaa9   : > { %v2233_v21 = vpop.permute.xlu0 %2232  ;;  %3809 = vmatmul.mubr.msk.f32.vlgmr.msra.gmra.mrb[26].mxu0 %vm629_vm2, %v4591_v5 }
 0xaaa   : > { %3802 = vmatpush3.xpose.msk.msra.mxu1 %vm629_vm2, %v2233_v21  ;;  %3818 = vmatprep.mubr.msk.f32.mxu0 %vm4120_vm0, %v4121_v9 }
 0xaab   : > { %3811 = vmatprep.subr.mxu1 %v4121_v9 }
 0xaad   : > { %3804 = vmatmul.mubr.msk.f32.vlgmr.msra.gmra.mrb[20].mxu1 %vm629_vm2, %v4598_v10 }
 0xaae   : > { %3813 = vmatprep.mubr.msk.f32.mxu1 %vm4120_vm0, %v4121_v9 }
 0xab1   : > { %v2387_v22 = vpop.permute.xlu1 %2386 }
 0xab2   : > { %3812 = vmatpush3.xpose.msk.msra.mxu1 %vm629_vm2, %v2387_v22 }
 0xab3   : > { %3821 = vmatprep.subr.mxu1 %v4121_v9 }
 0xab5   : > { %3814 = vmatmul.mubr.msk.f32.vlgmr.msra.gmra.mrb[22].mxu1 %vm629_vm2, %v4605_v14 }
 0xab6   : > { %3823 = vmatprep.mubr.msk.f32.mxu1 %vm4120_vm0, %v4121_v9 }
 0xb78   : > { %v2227_v23 = vpop.f32.mrb[18].mxu1 }
 0xb79   : > { %v2228_v24 = vadd.f32 %v2227_v23, %v4354_v51  ;;  %v3800_v25 = vpop.f32.mrb[19].mxu1 }
 0xb7b   : > { %v2462_v26 = vsel %vm629_vm2, %v2228_v24, -inf }
 0xb7c   : > { %2463 = vmax.xlane.f32.xlu0 %v2462_v26  ;;  %v2381_v27 = vpop.f32.mrb[26].mxu0 }
 0xb7d   : > { %v2382_v28 = vadd.f32 %v2381_v27, %v4354_v51  ;;  %v3810_v29 = vpop.f32.mrb[27].mxu0 }
 0xb7f   : > { %v2468_v30 = vsel %vm629_vm2, %v2382_v28, -inf }
 0xb80   : > { %v2304_v31 = vpop.f32.mrb[20].mxu1  ;;  %2469 = vmax.xlane.f32.xlu0 %v2468_v30 }
 0xb81   : > { %v2305_v32 = vadd.f32 %v2304_v31, %v4354_v51  ;;  %v3805_v33 = vpop.f32.mrb[21].mxu1 }
 0xb83   : > { %v2465_v35 = vsel %vm629_vm2, %v2305_v32, -inf }
 0xb84   : > { %2466 = vmax.xlane.f32.xlu1 %v2465_v35  ;;  %v3455_v35 = vld [vmem:[%s4823_s3 + $0x20] sm:$0xff] }
 0xb88   : > { %v2458_v36 = vpop.f32.mrb[22].mxu1 }
 0xb89   : > { %v2459_v37 = vadd.f32 %v2458_v36, %v4354_v51  ;;  %v3815_v18 = vpop.f32.mrb[23].mxu1  ;;  %v3456_v36 = vld [vmem:[%s4823_s3 + $0x28] sm:$0xff] }
 0xb8b   : > { %v2471_v40 = vsel %vm629_vm2, %v2459_v37, -inf }
 0xb8c   : > { %2472 = vmax.xlane.f32.xlu0 %v2471_v40 }
 0xb95   : > { %2518 = vrot.lane.b32.xlu1 %v1941_v63, %s4124_s17 }
 0xc09   : > { %v2464_v41 = vpop.xlane.xlu0 %2463 }
 0xc0a   : > { %v2474_v42 = vsub.f32 %v2228_v24, %v2464_v41 }
 0xc0c   : > { %v2478_v34 = vmul.f32 1.442695, %v2474_v42 }
 0xc0d   : > { %v2470_v43 = vpop.xlane.xlu0 %2469 }
 0xc0e   : > { %4035 = vpow2.f32 %v2478_v34  ;;  %v2476_v44 = vsub.f32 %v2382_v28, %v2470_v43  ;;  %v3458_v34 = vld [vmem:[%s4823_s3 + $0x38] sm:$0xff] }
 0xc10   : > { %v2482_v45 = vmul.f32 1.442695, %v2476_v44 }
 0xc11   : > { %v2467_v46 = vpop.xlane.xlu1 %2466 }
 0xc12   : > { %4037 = vpow2.f32 %v2482_v45  ;;  %v2475_v49 = vsub.f32 %v2305_v32, %v2467_v46 }
 0xc14   : > { %v2480_v19 = vmul.f32 1.442695, %v2475_v49 }
 0xc15   : > { %v2519_v50 = vpop.permute.xlu1 %2518 }
 0xc16   : > { %4039 = vpow2.f32 %v2480_v19  ;;  %3817 = vmatpush3.msra.mxu0 %v2519_v50 }
 0xc17   : > { %3826 = vmatprep.subr.mxu0 %v4121_v9 }
 0xc18   : > { %v4036_v51 = vpop.eup %4035 }
 0xc19   : > { %v2473_v52 = vpop.xlane.xlu0 %2472  ;;  %v2486_v55 = vsel %vm629_vm2, %v4036_v51, 0.0 }
 0xc1a   : > { %v2477_v56 = vsub.f32 %v2459_v37, %v2473_v52  ;;  %2487 = vadd.xlane.f32.xlu1 %v2486_v55  ;;  %v3457_v37 = vld [vmem:[%s4823_s3 + $0x30] sm:$0xff] }
 0xc1c   : > { %v4038_v57 = vpop.eup %4037  ;;  %v2484_v58 = vmul.f32 1.442695, %v2477_v56 }
 0xc1d   : > { %v2492_v59 = vsel %vm629_vm2, %v4038_v57, 0.0 }
 0xc1e   : > { %4041 = vpow2.f32 %v2484_v58  ;;  %2493 = vadd.xlane.f32.xlu1 %v2492_v59 }
 0xc20   : > { %v4040_v60 = vpop.eup %4039 }
 0xc21   : > { %v2489_v61 = vsel %vm629_vm2, %v4040_v60, 0.0 }
 0xc22   : > { %2490 = vadd.xlane.f32.xlu0 %v2489_v61  ;;  %v4701_v61 = vld [vmem:[%s4826_s6 + $0x8] sm:$0xff] }
 0xc28   : > { %v4042_v62 = vpop.eup %4041 }
 0xc29   : > { %v2495_v63 = vsel %vm629_vm2, %v4042_v62, 0.0 }
 0xc2a   : > { %2496 = vadd.xlane.f32.xlu0 %v2495_v63 }
 0xc2f   : > { %2670 = vrot.lane.b32.xlu1 %v4591_v5, %s4124_s17 }
 0xc33   : > { %2746 = vrot.lane.b32.xlu1 %v4605_v14, %s4124_s17 }
 0xc40   : > { %2594 = vrot.lane.b32.xlu0 %v4598_v10, %s4124_s17  ;;  %s4055_s17 = scalar_lea.vmem %s4779_s15, 128 }
 0xc41   : > { %p4056_p11 = scmp.ne.s32.totalorder %s4779_s15, %s4055_s17  ;;  %p4063_p1 = scmp.lt.s32.totalorder %s4061_s21, %s4055_s17 }
 0xc43   : > { %p4057_p12 = pnand %p4056_p11, %p4204_p5  ;;  %p4064_p2 = por %p4063_p1, %p4062_p0 }
 0xc45   : > { %p4058_p13 = pneg %p4057_p12 }
 0xc47   : > { %p4065_p3 = pnand %p4064_p2, %p4058_p13 }
 0xca7   : > { %v2488_v1 = vpop.xlane.xlu1 %2487 }
 0xca8   : > { %4043 = vrcp.f32 %v2488_v1 }
 0xcab   : > { %v2494_v2 = vpop.xlane.xlu1 %2493 }
 0xcac   : > { %4045 = vrcp.f32 %v2494_v2 }
 0xcaf   : > { %v2491_v4 = vpop.xlane.xlu0 %2490  ;;  %v2671_v10 = vpop.permute.xlu1 %2670 }
 0xcb0   : > { %4047 = vrcp.f32 %v2491_v4 }
 0xcb2   : > { %v4044_v6 = vpop.eup %4043 }
 0xcb3   : > { %v2502_v8 = vmul.f32 %v4044_v6, %v2488_v1  ;;  %v2747_v29 = vpop.permute.xlu1 %2746 }
 0xcb5   : > { %v2506_v11 = vsub.f32 2.0, %v2502_v8 }
 0xcb6   : > { %v4046_v12 = vpop.eup %4045 }
 0xcb7   : > { %v2510_v13 = vmul.f32 %v4044_v6, %v2506_v11  ;;  %v2504_v16 = vmul.f32 %v4046_v12, %v2494_v2  ;;  %v2497_v17 = vpop.xlane.xlu0 %2496 }
 0xcb8   : > { %4049 = vrcp.f32 %v2497_v17 }
 0xcb9   : > { %v2514_v5 = vmul.f32 %v4036_v51, %v2510_v13  ;;  %v2508_v20 = vsub.f32 2.0, %v2504_v16 }
 0xcba   : > { %v4048_v14 = vpop.eup %4047 }
 0xcbb   : > { %v2512_v21 = vmul.f32 %v4046_v12, %v2508_v20  ;;  %v2503_v22 = vmul.f32 %v4048_v14, %v2491_v4  ;;  %v2595_v23 = vpop.permute.xlu0 %2594  ;;  %3819 = vmatmul.mubr.msk.f32.vlgmr.msra.gmra.mrb[28].mxu0 %vm629_vm2, %v2514_v5  ;;  %v3460_v5 = vld [vmem:[%s4824_s4 + $0x28] sm:$0xff] }
 0xcbc   : > { %3822 = vmatpush3.msra.mxu1 %v2595_v23  ;;  %3827 = vmatpush3.msra.mxu0 %v2671_v10  ;;  %v3464_v10 = vld [vmem:[%s4825_s5 + $0x48] sm:$0xff]  ;;  %v3465_v23 = vld [vmem:[%s4825_s5 + $0x50] sm:$0xff] }
 0xcbd   : > { %v2516_v24 = vmul.f32 %v4038_v57, %v2512_v21  ;;  %v2507_v25 = vsub.f32 2.0, %v2503_v22  ;;  %3828 = vmatprep.mubr.msk.f32.mxu0 %vm4120_vm0, %v4121_v9  ;;  %3831 = vmatprep.subr.mxu1 %v4121_v9  ;;  %v3463_v22 = vld [vmem:[%s4825_s5 + $0x40] sm:$0xff] }
 0xcbe   : > { %3836 = vmatprep.subr.mxu0 %v4121_v9 }
 0xcbf   : > { %v2511_v26 = vmul.f32 %v4048_v14, %v2507_v25  ;;  %3829 = vmatmul.mubr.msk.f32.vlgmr.msra.gmra.mrb[30].mxu0 %vm629_vm2, %v2516_v24  ;;  %v3462_v14 = vld [vmem:[%s4824_s4 + $0x38] sm:$0xff]  ;;  %v3959_v24 = vpack.c.bf16 %v3464_v10, %v3463_v22 }
 0xcc0   : > { %3838 = vmatprep.mubr.msk.f32.mxu0 %vm4120_vm0, %v4121_v9  ;;  %3837 = vmatpush3.msra.mxu0 %v3455_v35  ;;  %v3466_v25 = vld [vmem:[%s4825_s5 + $0x58] sm:$0xff] }
 0xcc1   : > { %v2515_v27 = vmul.f32 %v4040_v60, %v2511_v26  ;;  %3846 = vmatprep.subr.mxu0 %v4121_v9  ;;  %v3962_v26 = vpack.c.bf16 %v3466_v25, %v3465_v23 }
 0xcc2   : > { %v4050_v28 = vpop.eup %4049 }
 0xcc3   : > { %v2505_v30 = vmul.f32 %v4050_v28, %v2497_v17  ;;  %3824 = vmatmul.mubr.msk.f32.vlgmr.msra.gmra.mrb[24].mxu1 %vm629_vm2, %v2515_v27  ;;  %v3467_v27 = vld [vmem:[%s4825_s5 + $0x60] sm:$0xff] }
 0xcc4   : > { %3832 = vmatpush3.msra.mxu1 %v2747_v29  ;;  %3833 = vmatprep.mubr.msk.f32.mxu1 %vm4120_vm0, %v4121_v9 }
 0xcc5   : > { %v2509_v31 = vsub.f32 2.0, %v2505_v30  ;;  %3841 = vmatprep.subr.mxu1 %v4121_v9 }
 0xcc7   : > { %v2513_v32 = vmul.f32 %v4050_v28, %v2509_v31  ;;  %v3468_v28 = vld [vmem:[%s4825_s5 + $0x68] sm:$0xff] }
 0xcc8   : > { %v3965_v29 = vpack.c.bf16 %v3468_v28, %v3467_v27 }
 0xcc9   : > { %v2517_v33 = vmul.f32 %v4042_v62, %v2513_v32  ;;  %v3124_v62 = vrot.slane %v4701_v61, %v1596_v15  ;;  %v3459_v15 = vld [vmem:[%s4824_s4 + $0x20] sm:$0xff] }
 0xcca   : > { %v3953_v20 = vpack.c.bf16 %v3460_v5, %v3459_v15 }
 0xccb   : > { %3834 = vmatmul.mubr.msk.f32.vlgmr.msra.gmra.mrb[26].mxu1 %vm629_vm2, %v2517_v33  ;;  %v3143_v33 = vrot.slane %v4701_v61, %v1616_v53  ;;  %v3153_v53 = vrot.slane %v4701_v61, %v1626_v0 }
 0xccc   : > { %3843 = vmatprep.mubr.msk.f32.mxu1 %vm4120_vm0, %v4121_v9  ;;  %3842 = vmatpush3.msra.mxu1 %v3456_v36 }
 0xccd   : > { %3851 = vmatprep.subr.mxu1 %v4121_v9 }
 0xd8e   : > { %v2590_v18 = vpop.f32.mrb[28].mxu0 }
 0xd8f   : > { %v3820_v40 = vpop.f32.mrb[29].mxu0  ;;  %3839 = vmatmul.mubr.msk.f32.vlgmr.msra.gmra.mrb[32].mxu0 %vm629_vm2, %v2590_v18 }
 0xd90   : > { %3847 = vmatpush3.msra.mxu0 %v3457_v37  ;;  %3848 = vmatprep.mubr.msk.f32.mxu0 %vm4120_vm0, %v4121_v9  ;;  %v3148_v37 = vrot.slane %v4701_v61, %v1621_v54 }
 0xd91   : > { %3952 = vmatprep.subr.bf16.mxu0 %v4119_v3 }
 0xd92   : > { %v2742_v41 = vpop.f32.mrb[30].mxu0 }
 0xd93   : > { %v3830_v42 = vpop.f32.mrb[31].mxu0  ;;  %3849 = vmatmul.mubr.msk.f32.vlgmr.msra.gmra.mrb[34].mxu0 %vm629_vm2, %v2742_v41  ;;  %v3470_v41 = vld [vmem:[%s4825_s5 + $0x78] sm:$0xff] }
 0xd94   : > { %3864 = vmatprep.mubr.msk.f32.mxu0 %vm4120_vm0, %v4121_v9  ;;  %3954 = vmatpush3.bf16.msra.mxu0 %v3953_v20 }
 0xd95   : > { %3955 = vmatprep.subr.bf16.mxu0 %v4119_v3 }
 0xd96   : > { %v2666_v43 = vpop.f32.mrb[24].mxu1 }
 0xd97   : > { %v3825_v44 = vpop.f32.mrb[25].mxu1  ;;  %3844 = vmatmul.mubr.msk.f32.vlgmr.msra.gmra.mrb[28].mxu1 %vm629_vm2, %v2666_v43 }
 0xd98   : > { %3852 = vmatpush3.msra.mxu1 %v3458_v34  ;;  %3853 = vmatprep.mubr.msk.f32.mxu1 %vm4120_vm0, %v4121_v9 }
 0xd99   : > { %3958 = vmatprep.subr.bf16.mxu1 %v4119_v3 }
 0xd9e   : > { %v2818_v45 = vpop.f32.mrb[26].mxu1 }
 0xd9f   : > { %v3835_v46 = vpop.f32.mrb[27].mxu1  ;;  %3854 = vmatmul.mubr.msk.f32.vlgmr.msra.gmra.mrb[30].mxu1 %vm629_vm2, %v2818_v45  ;;  %v3231_v45 = vrot.slane %v4701_v61, %v1704_v7  ;;  %v3322_v7 = vrot.slane %v4701_v61, %v1796_v38 }
 0xda0   : > { %3883 = vmatprep.mubr.msk.f32.mxu1 %vm4120_vm0, %v4121_v9  ;;  %3960 = vmatpush3.bf16.msra.mxu1 %v3959_v24 }
 0xda1   : > { %3961 = vmatprep.subr.bf16.mxu1 %v4119_v3 }
 0xda4   : > { %3963 = vmatpush3.bf16.msra.mxu1 %v3962_v26 }
 0xda5   : > { %3964 = vmatprep.subr.bf16.mxu1 %v4119_v3 }
 0xda8   : > { %3966 = vmatpush3.bf16.msra.mxu1 %v3965_v29 }
 0xda9   : > { %3967 = vmatprep.subr.bf16.mxu1 %v4119_v3  ;;  %v3469_v3 = vld [vmem:[%s4825_s5 + $0x70] sm:$0xff] }
 0xdaa   : > { %v3968_v42 = vpack.c.bf16 %v3470_v41, %v3469_v3 }
 0xdac   : > { %3969 = vmatpush3.bf16.msra.mxu1 %v3968_v42 }
 0xe62   : > { %v2891_v49 = vpop.f32.mrb[32].mxu0 }
 0xe63   : > { %v3840_v19 = vpop.f32.mrb[33].mxu0  ;;  %v3114_v55 = vsel %vm342_vm1, %v2891_v49, 0.0 }
 0xe66   : > { %v3037_v50 = vpop.f32.mrb[34].mxu0 }
 0xe67   : > { %v3850_v51 = vpop.f32.mrb[35].mxu0  ;;  %v3117_v59 = vsel %vm342_vm1, %v3037_v50, 0.0 }
 0xe6a   : > { %v2964_v52 = vpop.f32.mrb[28].mxu1 }
 0xe6b   : > { %v3115_v56 = vsel %vm342_vm1, %v2964_v52, 0.0  ;;  %v3845_v57 = vpop.f32.mrb[29].mxu1 }
 0xe6c   : > { %v3116_v58 = vadd.f32 %v3115_v56, %v3114_v55 }
 0xe6e   : > { %v3118_v60 = vadd.f32 %v3117_v59, %v3116_v58 }
 0xe72   : > { %v3110_v9 = vpop.f32.mrb[30].mxu1 }
 0xe73   : > { %v3119_v63 = vsel %vm342_vm1, %v3110_v9, 0.0  ;;  %v3855_v1 = vpop.f32.mrb[31].mxu1 }
 0xe74   : > { %v3120_v2 = vadd.f32 %v3119_v63, %v3118_v60  ;;  %v3327_v63 = vrot.slane %v4701_v61, %v1801_v39 }
 0xe76   : > { %v3125_v4 = vadd.f32 %v3124_v62, %v3120_v2 }
 0xe78   : > { %v3126_v6 = vadd.f32 %v3125_v4, %v4544_v47  ;;  %v3461_v47 = vld [vmem:[%s4824_s4 + $0x30] sm:$0xff] }
 0xe79   : > { %v3956_v21 = vpack.c.bf16 %v3462_v14, %v3461_v47 }
 0xe7a   : > { %v3127_v8 = vsel %vm342_vm1, %v3126_v6, 0.0 }
 0xe7b   : > { %3128 = vadd.xlane.f32.xlu0 %v3127_v8  ;;  %3957 = vmatpush3.bf16.msra.mxu0 %v3956_v21 }
 0xf08   : > { %v3129_v11 = vpop.xlane.xlu0 %3128 }
 0xf09   : > { %v3130_v12 = vmul.f32 0.03125, %v3129_v11 }
 0xf0b   : > { %v3131_v13 = vsub.f32 %v3126_v6, %v3130_v12 }
 0xf0d   : > { %v3132_v16 = vmul.f32 %v3131_v13, %v3131_v13 }
 0xf0f   : > { %v3133_v17 = vsel %vm342_vm1, %v3132_v16, 0.0 }
 0xf10   : > { %3134 = vadd.xlane.f32.xlu1 %v3133_v17 }
 0xf9d   : > { %v3135_v30 = vpop.xlane.xlu1 %3134 }
 0xf9e   : > { %v3136_v31 = vmul.f32 0.03125, %v3135_v30 }
 0xfa0   : > { %v3137_v32 = vadd.f32 1e-05, %v3136_v31 }
 0xfa2   : > { %4051 = vrsqrt.f32 %v3137_v32 }
 0xfac   : > { %v4052_v35 = vpop.eup %4051 }
 0xfad   : > { %v3139_v36 = vmul.f32 %v4052_v35, %v3131_v13 }
 0xfaf   : > { %v3144_v18 = vmul.f32 %v3143_v33, %v3139_v36 }
 0xfb1   : > { %v3149_v40 = vadd.f32 %v3148_v37, %v3144_v18 }
 0xfb3   : > { %3865 = vmatmul.mubr.msk.f32.vlgmr.msra.gmra.mrb[36].mxu0 %vm342_vm1, %v3149_v40 }
0x1086   : > { %v3223_v34 = vpop.f32.mrb[36].mxu0 }
0x1087   : > { %v3224_v54 = vadd.f32 %v3223_v34, %v3153_v53  ;;  %v3866_v43 = vpop.f32.mrb[37].mxu0 }
0x1089   : > { %v3227_v44 = vmax.f32 %v3224_v54, 0.0 }
0x108b   : > { %3884 = vmatmul.mubr.msk.f32.vlgmr.msra.gmra.mrb[32].mxu1 %vm1706_vm4, %v3227_v44 }
0x115e   : > { %v3301_v46 = vpop.f32.mrb[32].mxu1 }
0x115f   : > { %v3302_v49 = vadd.f32 %v3301_v46, %v3231_v45  ;;  %v3885_v19 = vpop.f32.mrb[33].mxu1 }
0x1161   : > { %v3305_v50 = vadd.f32 %v3302_v49, %v3149_v40 }
0x1163   : > { %v3306_v51 = vsel %vm342_vm1, %v3305_v50, 0.0 }
0x1164   : > { %3307 = vadd.xlane.f32.xlu0 %v3306_v51 }
0x11f1   : > { %v3308_v52 = vpop.xlane.xlu0 %3307 }
0x11f2   : > { %v3309_v0 = vmul.f32 0.03125, %v3308_v52 }
0x11f4   : > { %v3310_v55 = vsub.f32 %v3305_v50, %v3309_v0 }
0x11f6   : > { %v3311_v56 = vmul.f32 %v3310_v55, %v3310_v55 }
0x11f8   : > { %v3312_v57 = vsel %vm342_vm1, %v3311_v56, 0.0 }
0x11f9   : > { %3313 = vadd.xlane.f32.xlu0 %v3312_v57 }
0x1286   : > { %v3314_v58 = vpop.xlane.xlu0 %3313 }
0x1287   : > { %v3315_v59 = vmul.f32 0.03125, %v3314_v58 }
0x1289   : > { %v3316_v60 = vadd.f32 1e-05, %v3315_v59 }
0x128b   : > { %4053 = vrsqrt.f32 %v3316_v60 }
0x1295   : > { %v4054_v9 = vpop.eup %4053 }
0x1296   : > { %v3318_v62 = vmul.f32 %v4054_v9, %v3310_v55 }
0x1298   : > { %v3323_v1 = vmul.f32 %v3322_v7, %v3318_v62 }
0x129a   : > { %v3328_v2 = vadd.f32 %v3327_v63, %v3323_v1 }
0x129c   : > { %3329 = vst.msk [vmem:[%s269_s14] sm:$0xff] %vm342_vm1, %v3328_v2 }
0x129d   : > { %4068 = shalt.err (!%p4065_p3)
}
0x129e   : > { %s4069_s22 = scalar_lea.hbm %s4777_s19, 128  ;;  %s4073_s8 = scalar_lea.hbm %s4827_s7, 256 }
0x129f   : > { %p4070_p4 = scmp.ne.s32.totalorder %s4777_s19, %s4069_s22  ;;  %p4074_p9 = scmp.lt.u32.totalorder %s4777_s19, %s4827_s7 }
0x12a0   : > { %p4075_p10 = scmp.lt.u32.totalorder %s4073_s8, %s4069_s22  ;;  %p4077_p12 = scmp.lt.u32.totalorder %s4069_s22, %s4777_s19 }
0x12a1   : > { %p4071_p7 = pnand %p4070_p4, %p4204_p5 }
0x12a2   : > { %p4076_p11 = por %p4075_p10, %p4074_p9 }
0x12a3   : > { %p4072_p8 = pneg %p4071_p7 }
0x12a4   : > { %p4078_p13 = por %p4077_p12, %p4076_p11 }
0x12a6   : > { %p4079_p0 = pnand %p4078_p13, %p4072_p8 }
0x12a8   : > { %4082 = shalt.err (!%p4079_p0)
}
0x12a9   : > { %3970 = dma.vmem_to_hbm [thread:$0]  (%p4204_p5), %s4779_s15, 128, %s4777_s19, %s3331_s9  }
0x12aa PF: > { %p3976_p1 = scmp.ge.s32.totalorder %s4117_s27, 2  ;;  %s3356_s16 = sand.u32 1, %s4105_s24  }
0x12ab   : > { %s3357_s18 = scalar_lea.sflag [#allocation3], %s3356_s16 }
0x12ac   : > { %p3973_p2 = pnand %p3976_p1, %p4208_p6 }
0x12ae   : > { %4100 = dma.done.wait (!%p3973_p2), %s3357_s18, 128  }
0x12af   : > { %4102 = vsyncadd (!%p3973_p2), %s3357_s18, 4294967168  ;;  %p17_p3 = scmp.ge.s32.totalorder %s4191_s30, 4   ;;  %s4830_s24 = smov %s4109_s25 }
0x12b0   : > { %s4831_s25 = smov %s4113_s26  ;;  %s4832_s26 = smov %s4202_s10 }
0x12b1   : > { %s4833_s27 = smov %s4191_s30  ;;  %19 = sbr.rel (!%p17_p3) target bundleno = 3 (0x3), region = 89 }
0x12b8   :  { %3362 = vsyncpa [#allocation3], 1 }
0x12b9   :  { %3364 = vsyncpa [#allocation3 + $0x1], 1 }

</bundles_post_ra>
